<compile_context>
chip_gen: v5e
topology: v5e:2x2
jax: 0.10.0
libtpu: 0.0.40
codegen_flags: <defaults>
</compile_context>

<pallas_src>
import functools

import jax
import jax.numpy as jnp
from jax.experimental import pallas as pl
from jax.experimental.pallas import tpu as pltpu

NEG_SLOPE = 0.2            # PyG GATConv default LeakyReLU negative slope
MASK_VAL = -1e30           # additive mask for non-edges (exp underflows to exactly 0)
LANE = 128                 # TPU lane width; classifier output padded to this
TILE = 128                 # target-node rows per grid step in the tiled path (mult. of 32)
FUSED_MAX_N = 1024         # graphs up to this many nodes use the single fused call
VMEM_LIMIT_BYTES = 48 * 1024 * 1024   # leaves headroom under v7x's 64 MiB physical VMEM


def _round_up(a, b):
    return ((a + b - 1) // b) * b


def _full_spec(shape):
    return pl.BlockSpec(shape, lambda i: (0,) * len(shape))


def _compiler_params(semantics):
    return pltpu.CompilerParams(dimension_semantics=semantics,
                                vmem_limit_bytes=VMEM_LIMIT_BYTES)


# --------------------------------------------------------------------------- shared math

def _mask_add_from_adj(adj_i8):
    """int8 0/1 adjacency tile -> f32 additive mask (0 on edges, -1e30 elsewhere).
    Built once per tile and reused by every head (and every layer in the fused path)."""
    adj_f = adj_i8.astype(jnp.float32)
    return jnp.where(adj_f == 0.0, MASK_VAL, 0.0)


def _head_attention(mask_add, a_src_row, a_dst_col, a_src_max, hh_bf16):
    """Masked-softmax attention + aggregation for one head on one tile of target rows.

    mask_add: [T, N] f32, a_src_row: [1, N] f32, a_dst_col: [T, 1] f32,
    a_src_max: scalar f32 (max over ALL source nodes), hh_bf16: [N, C] bf16.
    Returns [T, C] f32 (bias not yet added).
    """
    e_raw = a_dst_col + a_src_row                         # [T, N]
    e = jnp.maximum(e_raw, NEG_SLOPE * e_raw)             # LeakyReLU (maximum form)
    # Cheap per-row upper bound of max_j e_ij (LeakyReLU monotone) -> exp <= 1, softmax
    # unchanged (shift-invariant).  Replaces the full [T,N] cross-lane max reduce.
    m_raw = a_dst_col + a_src_max                         # [T, 1]
    m = jnp.maximum(m_raw, NEG_SLOPE * m_raw)
    p = jnp.exp(e + mask_add - m)                         # non-edges underflow to 0
    inv = pl.reciprocal(jnp.sum(p, axis=1, keepdims=True), approx=True)   # EUP, ~free
    # Aggregation on the MXU in bf16 with f32 accumulation; normalization deferred to a
    # [T, C] multiply instead of a [T, N] one.
    agg = jnp.dot(p.astype(jnp.bfloat16), hh_bf16, preferred_element_type=jnp.float32)
    return agg * inv


def _gat_from_proj(mask_add, proj, hh_bf16, bias, heads, out_ch, relu):
    """Attention + aggregation for all heads given the projected features.
    proj: [*, hc + 2*heads] f32 (cols: hc features | heads a_src | heads a_dst)."""
    hc = heads * out_ch
    cols = []
    for hd in range(heads):                               # trace-time unroll
        a_src_row = proj[:, hc + hd][None, :]             # [1, N]
        a_dst_col = proj[:, hc + heads + hd][:, None]     # [T, 1]  (T == N here)
        cols.append(_head_attention(mask_add, a_src_row, a_dst_col,
                                    jnp.max(a_src_row),
                                    hh_bf16[:, hd * out_ch:(hd + 1) * out_ch]))
    out = cols[0] if heads == 1 else jnp.concatenate(cols, axis=1)
    out = out + bias
    if relu:
        out = jnp.maximum(out, 0.0)
    return out                                            # [T, hc] f32


# --------------------------------------------------------------------------- kernels

def _gcn_fused_kernel(adj_ref, x_ref, w1_ref, b1_ref, w2_ref, b2_ref,
                      w3_ref, b3_ref, wc_ref, bc_ref, out_ref):
    """Whole forward pass (3x GATConv + Linear) with the graph resident in VMEM."""
    mask_add = _mask_add_from_adj(adj_ref[...])           # [N, N], built once, reused 3x

    def gat(h_bf16, wcat, bias, heads, c, relu):
        hc = heads * c
        proj = jnp.dot(h_bf16, wcat, preferred_element_type=jnp.float32)  # bf16 MXU
        hh = proj[:, :hc].astype(jnp.bfloat16)
        return _gat_from_proj(mask_add, proj, hh, bias, heads, c, relu)

    h = gat(x_ref[...], w1_ref[...], b1_ref[...], 2, 8, True)             # conv1 + relu
    h = gat(h.astype(jnp.bfloat16), w2_ref[...], b2_ref[...], 2, 4, True)  # conv2 + relu
    # TODO(synk): nn.Dropout(p=0.5) is eval-mode identity (training RNG not reproduced).
    h = gat(h.astype(jnp.bfloat16), w3_ref[...], b3_ref[...], 1, 4, False)  # conv3
    out_ref[...] = (jnp.dot(h, wc_ref[...], preferred_element_type=jnp.float32)
                    + bc_ref[...])                        # classifier, lane-dense store


def _proj_kernel(h_ref, wcat_ref, hh_ref, asrc_ref, adst_ref, *, hc, heads):
    """Row-tiled projection: one bf16 MXU matmul produces projected features AND both
    attention scores (attention vectors were folded into wcat in the wrapper)."""
    p = jnp.dot(h_ref[...], wcat_ref[...], preferred_element_type=jnp.float32)
    hh_ref[...] = p[:, :hc].astype(jnp.bfloat16)
    asrc_ref[...] = p[:, hc:hc + heads]
    adst_ref[...] = p[:, hc + heads:]


def _gat_attn_kernel(adj_ref, hh_ref, asrc_ref, adst_ref, bias_ref, out_ref, *,
                     heads, out_ch, relu):
    """Row-tiled GATConv attention layer (projection already precomputed)."""
    mask_add = _mask_add_from_adj(adj_ref[...])           # [T, N], hoisted over heads
    hh = hh_ref[...]                                      # [N, hc] bf16 (resident)
    asrc = asrc_ref[...]                                  # [N, heads] f32 (resident)
    adst = adst_ref[...]                                  # [T, heads] f32 (this tile)
    cols = []
    for hd in range(heads):
        a_src_row = asrc[:, hd][None, :]
        cols.append(_head_attention(mask_add, a_src_row, adst[:, hd][:, None],
                                    jnp.max(a_src_row),
                                    hh[:, hd * out_ch:(hd + 1) * out_ch]))
    out = cols[0] if heads == 1 else jnp.concatenate(cols, axis=1)
    out = out + bias_ref[...]
    if relu:
        out = jnp.maximum(out, 0.0)
    out_ref[...] = out.astype(out_ref.dtype)              # single store per tile


def _gat_cls_kernel(adj_ref, hh_ref, asrc_ref, adst_ref, bias_ref, wc_ref, bc_ref,
                    out_ref):
    """conv3 (heads=1) fused with the Linear classifier; out is lane-padded to 128."""
    mask_add = _mask_add_from_adj(adj_ref[...])
    a_src_row = asrc_ref[...][:, 0][None, :]              # [1, N]
    h3 = _head_attention(mask_add, a_src_row, adst_ref[...][:, 0][:, None],
                         jnp.max(a_src_row), hh_ref[...]) + bias_ref[...]   # [T, 4]
    out_ref[...] = (jnp.dot(h3, wc_ref[...], preferred_element_type=jnp.float32)
                    + bc_ref[...])


# --------------------------------------------------------------------------- pallas_call wrappers

def _fused_forward(adj, x_bf16, wcats, biases, wc_pad, bc_pad, n_pad):
    return pl.pallas_call(
        _gcn_fused_kernel,
        out_shape=jax.ShapeDtypeStruct((n_pad, LANE), jnp.float32),
        grid_spec=pltpu.PrefetchScalarGridSpec(
            num_scalar_prefetch=0,
            grid=(1,),
            in_specs=[
                _full_spec((n_pad, n_pad)),               # int8 adjacency (only O(N^2) stream)
                _full_spec(x_bf16.shape),
                _full_spec(wcats[0].shape), _full_spec(biases[0].shape),
                _full_spec(wcats[1].shape), _full_spec(biases[1].shape),
                _full_spec(wcats[2].shape), _full_spec(biases[2].shape),
                _full_spec(wc_pad.shape), _full_spec(bc_pad.shape),
            ],
            out_specs=pl.BlockSpec((n_pad, LANE), lambda i: (0, 0)),
        ),
        compiler_params=_compiler_params(("arbitrary",)),
    )(adj, x_bf16, wcats[0], biases[0], wcats[1], biases[1], wcats[2], biases[2],
      wc_pad, bc_pad)


def _project(h_bf16, wcat_bf16, *, heads, out_ch, tile):
    n_pad, f_in = h_bf16.shape
    hc = heads * out_ch
    kernel = functools.partial(_proj_kernel, hc=hc, heads=heads)
    return pl.pallas_call(
        kernel,
        out_shape=(jax.ShapeDtypeStruct((n_pad, hc), jnp.bfloat16),
                   jax.ShapeDtypeStruct((n_pad, heads), jnp.float32),
                   jax.ShapeDtypeStruct((n_pad, heads), jnp.float32)),
        grid_spec=pltpu.PrefetchScalarGridSpec(
            num_scalar_prefetch=0,
            grid=(n_pad // tile,),
            in_specs=[pl.BlockSpec((tile, f_in), lambda i: (i, 0)),
                      _full_spec(wcat_bf16.shape)],
            out_specs=(pl.BlockSpec((tile, hc), lambda i: (i, 0)),
                       pl.BlockSpec((tile, heads), lambda i: (i, 0)),
                       pl.BlockSpec((tile, heads), lambda i: (i, 0))),
        ),
        compiler_params=_compiler_params(("parallel",)),
    )(h_bf16, wcat_bf16)


def _attention(adj, hh, asrc, adst, bias, *, heads, out_ch, relu, tile):
    n_pad = adj.shape[0]
    hc = heads * out_ch
    kernel = functools.partial(_gat_attn_kernel, heads=heads, out_ch=out_ch, relu=relu)
    return pl.pallas_call(
        kernel,
        out_shape=jax.ShapeDtypeStruct((n_pad, hc), jnp.bfloat16),
        grid_spec=pltpu.PrefetchScalarGridSpec(
            num_scalar_prefetch=0,
            grid=(n_pad // tile,),
            in_specs=[
                pl.BlockSpec((tile, n_pad), lambda i: (i, 0)),   # int8 adjacency rows
                _full_spec((n_pad, hc)),                         # bf16 projected sources
                _full_spec((n_pad, heads)),                      # a_src, all nodes
                pl.BlockSpec((tile, heads), lambda i: (i, 0)),   # a_dst, this tile
                _full_spec(bias.shape),
            ],
            out_specs=pl.BlockSpec((tile, hc), lambda i: (i, 0)),
        ),
        compiler_params=_compiler_params(("parallel",)),
    )(adj, hh, asrc, adst, bias)


def _attention_classifier(adj, hh, asrc, adst, bias, wc_pad, bc_pad, *, tile):
    n_pad = adj.shape[0]
    return pl.pallas_call(
        _gat_cls_kernel,
        out_shape=jax.ShapeDtypeStruct((n_pad, LANE), jnp.float32),
        grid_spec=pltpu.PrefetchScalarGridSpec(
            num_scalar_prefetch=0,
            grid=(n_pad // tile,),
            in_specs=[
                pl.BlockSpec((tile, n_pad), lambda i: (i, 0)),
                _full_spec(hh.shape),
                _full_spec(asrc.shape),
                pl.BlockSpec((tile, 1), lambda i: (i, 0)),
                _full_spec(bias.shape),
                _full_spec(wc_pad.shape),
                _full_spec(bc_pad.shape),
            ],
            out_specs=pl.BlockSpec((tile, LANE), lambda i: (i, 0)),
        ),
        compiler_params=_compiler_params(("parallel",)),
    )(adj, hh, asrc, adst, bias, wc_pad, bc_pad)


# --------------------------------------------------------------------------- forward

def _fold_gat_weights(w, att_src, att_dst):
    """W_cat = [W | W@att_src | W@att_dst]: per-head attention scores fall out of the same
    MXU matmul as the projected features.  Stored in bf16 (native bf16 MXU projection)."""
    f_in = w.shape[0]
    heads, c = att_src.shape
    w3 = w.reshape(f_in, heads, c)
    a_s = jnp.einsum("fhc,hc->fh", w3, att_src)
    a_d = jnp.einsum("fhc,hc->fh", w3, att_dst)
    return jnp.concatenate([w, a_s, a_d], axis=1).astype(jnp.bfloat16)


def gcn_forward(x, edge_index, params, num_class, force_tiled=False):
    """GCN forward (GATConv x3 + Linear classifier).

    x:          [N, feat_dim] f32 node features
    edge_index: [2, E] int (row 0 = source, row 1 = target), PyG convention
    params:     [w1, as1, ad1, b1, w2, as2, ad2, b2, w3, as3, ad3, b3, wc, bc]
    """
    (w1, as1, ad1, b1,
     w2, as2, ad2, b2,
     w3, as3, ad3, b3,
     wc, bc) = params

    n, feat = x.shape
    fused = (not force_tiled) and (n <= FUSED_MAX_N)
    if fused:
        n_pad = _round_up(max(n, 8), 32)      # multiple of 32 (int8 sublane packing)
        tile = n_pad
    else:
        tile = TILE
        n_pad = _round_up(n, tile)

    # Node features: bf16 (native bf16 MXU projection), padded rows zero.
    x_p = jnp.zeros((n_pad, feat), jnp.bfloat16).at[:n, :].set(x.astype(jnp.bfloat16))

    # Densify edge_index into an int8 0/1 adjacency; adj[i, j] = 1 iff edge j -> i.
    # Self-loops on ALL padded rows (GATConv default add_self_loops=True; also keeps every
    # row's softmax denominator > 0, so padded rows stay finite and can't poison layer 2+).
    adj = jnp.zeros((n_pad, n_pad), jnp.int8)
    adj = adj.at[edge_index[1], edge_index[0]].set(1)
    adj = adj.at[jnp.arange(n_pad), jnp.arange(n_pad)].set(1)

    # Fold attention vectors into the projection weights (once, outside the kernels).
    wcat1 = _fold_gat_weights(w1, as1, ad1)
    wcat2 = _fold_gat_weights(w2, as2, ad2)
    wcat3 = _fold_gat_weights(w3, as3, ad3)
    b1f = b1.astype(jnp.float32)
    b2f = b2.astype(jnp.float32)
    b3f = b3.astype(jnp.float32)

    # Lane-pad the classifier so the final store is lane-dense (128 wide).
    wc_p = jnp.zeros((wc.shape[0], LANE), jnp.float32).at[:, :num_class].set(
        wc.astype(jnp.float32))
    bc_p = jnp.zeros((1, LANE), jnp.float32).at[:, :num_class].set(bc.astype(jnp.float32))

    if fused:
        out = _fused_forward(adj, x_p, (wcat1, wcat2, wcat3), (b1f, b2f, b3f),
                             wc_p, bc_p, n_pad)
    else:
        # conv1: GATConv(feat -> 8, heads=2) + ReLU
        hh, asrc, adst = _project(x_p, wcat1, heads=2, out_ch=8, tile=tile)
        h = _attention(adj, hh, asrc, adst, b1f, heads=2, out_ch=8, relu=True, tile=tile)
        # conv2: GATConv(16 -> 4, heads=2) + ReLU
        hh, asrc, adst = _project(h, wcat2, heads=2, out_ch=4, tile=tile)
        h = _attention(adj, hh, asrc, adst, b2f, heads=2, out_ch=4, relu=True, tile=tile)
        # TODO(synk): nn.Dropout(p=0.5) treated as eval-mode identity.
        # conv3: GATConv(8 -> 4, heads=1) fused with classifier Linear(4 -> num_class)
        hh, asrc, adst = _project(h, wcat3, heads=1, out_ch=4, tile=tile)
        out = _attention_classifier(adj, hh, asrc, adst, b3f, wc_p, bc_p, tile=tile)

    return out[:n, :num_class]


# --------------------------------------------------------------------------- reference & demo

def _reference_forward(x, edge_index, params, num_class):
    """Plain-JAX dense f32 reference mirroring PyG GATConv semantics."""
    (w1, as1, ad1, b1, w2, as2, ad2, b2, w3, as3, ad3, b3, wc, bc) = params
    n = x.shape[0]
    adj = jnp.zeros((n, n), jnp.float32)
    adj = adj.at[edge_index[1], edge_index[0]].set(1.0)
    adj = adj.at[jnp.arange(n), jnp.arange(n)].set(1.0)

    def gat(h, w, a_s, a_d, b, heads, c):
        hp = h @ w
        outs = []
        for hd in range(heads):
            hh = hp[:, hd * c:(hd + 1) * c]
            e = (hh @ a_d[hd])[:, None] + (hh @ a_s[hd])[None, :]
            e = jnp.where(e > 0, e, NEG_SLOPE * e)
            e = jnp.where(adj > 0, e, -jnp.inf)
            outs.append(jax.nn.softmax(e, axis=1) @ hh)
        return jnp.concatenate(outs, axis=1) + b

    h = jax.nn.relu(gat(x, w1, as1, ad1, b1, 2, 8))
    h = jax.nn.relu(gat(h, w2, as2, ad2, b2, 2, 4))
    h = gat(h, w3, as3, ad3, b3, 1, 4)
    return h @ wc + bc


if __name__ == "__main__":
    key = jax.random.PRNGKey(0)
    N, feat_dim, num_class = 8, 16, 3
    keys = jax.random.split(key, 16)

    def g(k, shape, scale=0.1):
        return (scale * jax.random.normal(k, shape)).astype(jnp.float32)

    # Node features
    x = g(keys[0], (N, feat_dim), scale=1.0)

    # Small bidirectional ring graph: edge_index [2, E], row 0 = source, row 1 = target.
    src = jnp.arange(N)
    dst = (src + 1) % N
    edge_index = jnp.stack([jnp.concatenate([src, dst]),
                            jnp.concatenate([dst, src])])

    # Deterministic synthetic parameters (shapes from the module __init__)
    params = [
        # conv1: in=feat_dim, out=8, heads=2
        g(keys[1], (feat_dim, 16)), g(keys[2], (2, 8)), g(keys[3], (2, 8)), g(keys[4], (1, 16)),
        # conv2: in=16, out=4, heads=2
        g(keys[5], (16, 8)), g(keys[6], (2, 4)), g(keys[7], (2, 4)), g(keys[8], (1, 8)),
        # conv3: in=8, out=4, heads=1
        g(keys[9], (8, 4)), g(keys[10], (1, 4)), g(keys[11], (1, 4)), g(keys[12], (1, 4)),
        # classifier: Linear(4, num_class)
        g(keys[13], (4, num_class)), g(keys[14], (1, num_class)),
    ]

    # ---- test 1: tiny demo graph -> fused single-call path ----
    out = gcn_forward(x, edge_index, params, num_class)
    jax.block_until_ready(out)
    assert out.shape == (N, num_class) and out.dtype == jnp.float32
    ref = _reference_forward(x, edge_index, params, num_class)
    assert jnp.allclose(out, ref, atol=2e-2, rtol=2e-2), \
        f"fused path max abs err {float(jnp.max(jnp.abs(out - ref)))}"

    # ---- test 2: medium graph -> row-tiled multi-call path (grid > 1) ----
    N2 = 200
    x2 = g(keys[15], (N2, feat_dim), scale=1.0)
    src2 = jnp.arange(N2)
    e_src = jnp.concatenate([src2, src2, src2])
    e_dst = jnp.concatenate([(src2 + 1) % N2, (src2 + 5) % N2, (src2 + 13) % N2])
    edge_index2 = jnp.stack([jnp.concatenate([e_src, e_dst]),
                             jnp.concatenate([e_dst, e_src])])
    out2 = gcn_forward(x2, edge_index2, params, num_class, force_tiled=True)
    jax.block_until_ready(out2)
    assert out2.shape == (N2, num_class) and out2.dtype == jnp.float32
    ref2 = _reference_forward(x2, edge_index2, params, num_class)
    assert jnp.allclose(out2, ref2, atol=2e-2, rtol=2e-2), \
        f"tiled path max abs err {float(jnp.max(jnp.abs(out2 - ref2)))}"

    print("KERNEL_OK")
</pallas_src>

<mosaic_0001>
module attributes {stable_mosaic.version = 11 : i64} {
  func.func @_gcn_fused_kernel(%arg0: i32, %arg1: memref<32x32xi8, #tpu.memory_space<vmem>>, %arg2: memref<32x16xbf16, #tpu.memory_space<vmem>>, %arg3: memref<16x20xbf16, #tpu.memory_space<vmem>>, %arg4: memref<1x16xf32, #tpu.memory_space<vmem>>, %arg5: memref<16x12xbf16, #tpu.memory_space<vmem>>, %arg6: memref<1x8xf32, #tpu.memory_space<vmem>>, %arg7: memref<8x6xbf16, #tpu.memory_space<vmem>>, %arg8: memref<1x4xf32, #tpu.memory_space<vmem>>, %arg9: memref<4x128xf32, #tpu.memory_space<vmem>>, %arg10: memref<1x128xf32, #tpu.memory_space<vmem>>, %arg11: memref<32x128xf32, #tpu.memory_space<vmem>>) attributes {dimension_semantics = [#tpu.dimension_semantics<arbitrary>], iteration_bounds = array<i64: 1>, scalar_prefetch = 0 : i64, scratch_operands = 0 : i64, tpu.core_type = #tpu.core_type<tc>, window_params = [{pipeline_mode = #tpu.pipeline_mode<synchronous>, transform_indices = @transform_0, window_bounds = array<i64: 32, 32>}, {pipeline_mode = #tpu.pipeline_mode<synchronous>, transform_indices = @transform_1, window_bounds = array<i64: 32, 16>}, {pipeline_mode = #tpu.pipeline_mode<synchronous>, transform_indices = @transform_2, window_bounds = array<i64: 16, 20>}, {pipeline_mode = #tpu.pipeline_mode<synchronous>, transform_indices = @transform_3, window_bounds = array<i64: 1, 16>}, {pipeline_mode = #tpu.pipeline_mode<synchronous>, transform_indices = @transform_4, window_bounds = array<i64: 16, 12>}, {pipeline_mode = #tpu.pipeline_mode<synchronous>, transform_indices = @transform_5, window_bounds = array<i64: 1, 8>}, {pipeline_mode = #tpu.pipeline_mode<synchronous>, transform_indices = @transform_6, window_bounds = array<i64: 8, 6>}, {pipeline_mode = #tpu.pipeline_mode<synchronous>, transform_indices = @transform_7, window_bounds = array<i64: 1, 4>}, {pipeline_mode = #tpu.pipeline_mode<synchronous>, transform_indices = @transform_8, window_bounds = array<i64: 4, 128>}, {pipeline_mode = #tpu.pipeline_mode<synchronous>, transform_indices = @transform_9, window_bounds = array<i64: 1, 128>}, {pipeline_mode = #tpu.pipeline_mode<synchronous>, transform_indices = @transform_10, window_bounds = array<i64: 32, 128>}]} {
    %c0 = arith.constant 0 : index
    %c0_0 = arith.constant 0 : index
    %0 = vector.load %arg1[%c0, %c0_0] : memref<32x32xi8, #tpu.memory_space<vmem>>, vector<32x32xi8>
    %1 = arith.sitofp %0 : vector<32x32xi8> to vector<32x32xf32>
    %cst = arith.constant 0.000000e+00 : f32
    %2 = vector.broadcast %cst : f32 to vector<32x32xf32>
    %3 = arith.cmpf oeq, %1, %2 : vector<32x32xf32>
    %cst_1 = arith.constant -1.000000e+30 : f32
    %cst_2 = arith.constant 0.000000e+00 : f32
    %4 = vector.broadcast %cst_1 : f32 to vector<32x32xf32>
    %5 = vector.broadcast %cst_2 : f32 to vector<32x32xf32>
    %6 = arith.select %3, %4, %5 : vector<32x32xi1>, vector<32x32xf32>
    %c0_3 = arith.constant 0 : index
    %c0_4 = arith.constant 0 : index
    %7 = vector.load %arg2[%c0_3, %c0_4] : memref<32x16xbf16, #tpu.memory_space<vmem>>, vector<32x16xbf16>
    %c0_5 = arith.constant 0 : index
    %c0_6 = arith.constant 0 : index
    %8 = vector.load %arg3[%c0_5, %c0_6] : memref<16x20xbf16, #tpu.memory_space<vmem>>, vector<16x20xbf16>
    %c0_7 = arith.constant 0 : index
    %c0_8 = arith.constant 0 : index
    %9 = vector.load %arg4[%c0_7, %c0_8] : memref<1x16xf32, #tpu.memory_space<vmem>>, vector<1x16xf32>
    %cst_9 = arith.constant dense<0.000000e+00> : vector<32x20xf32>
    %10 = tpu.matmul %7, %8, %cst_9 {dimension_numbers = #tpu.dot_dimension_numbers<[1], [0], [0], [1], [0, 0, 1, 1], [], []>} : vector<32x16xbf16>, vector<16x20xbf16>, vector<32x20xf32> -> vector<32x20xf32>
    %11 = vector.extract_strided_slice %10 {offsets = [0, 0], sizes = [32, 16], strides = [1, 1]} : vector<32x20xf32> to vector<32x16xf32>
    %12 = arith.truncf %11 : vector<32x16xf32> to vector<32x16xbf16>
    %13 = vector.extract_strided_slice %10 {offsets = [0, 16], sizes = [32, 1], strides = [1, 1]} : vector<32x20xf32> to vector<32x1xf32>
    %14 = vector.shape_cast %13 : vector<32x1xf32> to vector<32xf32>
    %15 = vector.shape_cast %14 : vector<32xf32> to vector<1x32xf32>
    %16 = vector.extract_strided_slice %10 {offsets = [0, 18], sizes = [32, 1], strides = [1, 1]} : vector<32x20xf32> to vector<32x1xf32>
    %17 = vector.shape_cast %16 : vector<32x1xf32> to vector<32xf32>
    %18 = vector.shape_cast %17 : vector<32xf32> to vector<32x1xf32>
    %19 = vector.shape_cast %15 : vector<1x32xf32> to vector<1x1x32xf32>
    %cst_10 = arith.constant dense<0xFF800000> : vector<1xf32>
    %20 = vector.multi_reduction <maximumf>, %19, %cst_10 [1, 2] : vector<1x1x32xf32> to vector<1xf32>
    %21 = vector.shape_cast %20 : vector<1xf32> to vector<1x1x1xf32>
    %22 = vector.extract %21[0, 0, 0] : f32 from vector<1x1x1xf32>
    %23 = vector.extract_strided_slice %12 {offsets = [0, 0], sizes = [32, 8], strides = [1, 1]} : vector<32x16xbf16> to vector<32x8xbf16>
    %24 = vector.broadcast %18 : vector<32x1xf32> to vector<32x32xf32>
    %25 = vector.broadcast %15 : vector<1x32xf32> to vector<32x32xf32>
    %26 = arith.addf %24, %25 : vector<32x32xf32>
    %cst_11 = arith.constant 2.000000e-01 : f32
    %27 = vector.broadcast %cst_11 : f32 to vector<32x32xf32>
    %28 = arith.mulf %27, %26 : vector<32x32xf32>
    %29 = arith.maximumf %26, %28 : vector<32x32xf32>
    %30 = vector.broadcast %22 : f32 to vector<32x1xf32>
    %31 = arith.addf %18, %30 : vector<32x1xf32>
    %cst_12 = arith.constant 2.000000e-01 : f32
    %32 = vector.broadcast %cst_12 : f32 to vector<32x1xf32>
    %33 = arith.mulf %32, %31 : vector<32x1xf32>
    %34 = arith.maximumf %31, %33 : vector<32x1xf32>
    %35 = arith.addf %29, %6 : vector<32x32xf32>
    %36 = vector.broadcast %34 : vector<32x1xf32> to vector<32x32xf32>
    %37 = arith.subf %35, %36 : vector<32x32xf32>
    %38 = math.exp %37 : vector<32x32xf32>
    %cst_13 = arith.constant dense<0.000000e+00> : vector<32xf32>
    %39 = vector.multi_reduction <add>, %38, %cst_13 [1] : vector<32x32xf32> to vector<32xf32>
    %40 = vector.shape_cast %39 : vector<32xf32> to vector<32x1xf32>
    %41 = tpu.reciprocal %40 {approx = true} : vector<32x1xf32> -> vector<32x1xf32>
    %42 = arith.truncf %38 : vector<32x32xf32> to vector<32x32xbf16>
    %cst_14 = arith.constant dense<0.000000e+00> : vector<32x8xf32>
    %43 = tpu.matmul %42, %23, %cst_14 {dimension_numbers = #tpu.dot_dimension_numbers<[1], [0], [0], [1], [0, 0, 1, 1], [], []>} : vector<32x32xbf16>, vector<32x8xbf16>, vector<32x8xf32> -> vector<32x8xf32>
    %44 = vector.broadcast %41 : vector<32x1xf32> to vector<32x8xf32>
    %45 = arith.mulf %43, %44 : vector<32x8xf32>
    %46 = vector.extract_strided_slice %10 {offsets = [0, 17], sizes = [32, 1], strides = [1, 1]} : vector<32x20xf32> to vector<32x1xf32>
    %47 = vector.shape_cast %46 : vector<32x1xf32> to vector<32xf32>
    %48 = vector.shape_cast %47 : vector<32xf32> to vector<1x32xf32>
    %49 = vector.extract_strided_slice %10 {offsets = [0, 19], sizes = [32, 1], strides = [1, 1]} : vector<32x20xf32> to vector<32x1xf32>
    %50 = vector.shape_cast %49 : vector<32x1xf32> to vector<32xf32>
    %51 = vector.shape_cast %50 : vector<32xf32> to vector<32x1xf32>
    %52 = vector.shape_cast %48 : vector<1x32xf32> to vector<1x1x32xf32>
    %cst_15 = arith.constant dense<0xFF800000> : vector<1xf32>
    %53 = vector.multi_reduction <maximumf>, %52, %cst_15 [1, 2] : vector<1x1x32xf32> to vector<1xf32>
    %54 = vector.shape_cast %53 : vector<1xf32> to vector<1x1x1xf32>
    %55 = vector.extract %54[0, 0, 0] : f32 from vector<1x1x1xf32>
    %56 = vector.extract_strided_slice %12 {offsets = [0, 8], sizes = [32, 8], strides = [1, 1]} : vector<32x16xbf16> to vector<32x8xbf16>
    %57 = vector.broadcast %51 : vector<32x1xf32> to vector<32x32xf32>
    %58 = vector.broadcast %48 : vector<1x32xf32> to vector<32x32xf32>
    %59 = arith.addf %57, %58 : vector<32x32xf32>
    %cst_16 = arith.constant 2.000000e-01 : f32
    %60 = vector.broadcast %cst_16 : f32 to vector<32x32xf32>
    %61 = arith.mulf %60, %59 : vector<32x32xf32>
    %62 = arith.maximumf %59, %61 : vector<32x32xf32>
    %63 = vector.broadcast %55 : f32 to vector<32x1xf32>
    %64 = arith.addf %51, %63 : vector<32x1xf32>
    %cst_17 = arith.constant 2.000000e-01 : f32
    %65 = vector.broadcast %cst_17 : f32 to vector<32x1xf32>
    %66 = arith.mulf %65, %64 : vector<32x1xf32>
    %67 = arith.maximumf %64, %66 : vector<32x1xf32>
    %68 = arith.addf %62, %6 : vector<32x32xf32>
    %69 = vector.broadcast %67 : vector<32x1xf32> to vector<32x32xf32>
    %70 = arith.subf %68, %69 : vector<32x32xf32>
    %71 = math.exp %70 : vector<32x32xf32>
    %cst_18 = arith.constant dense<0.000000e+00> : vector<32xf32>
    %72 = vector.multi_reduction <add>, %71, %cst_18 [1] : vector<32x32xf32> to vector<32xf32>
    %73 = vector.shape_cast %72 : vector<32xf32> to vector<32x1xf32>
    %74 = tpu.reciprocal %73 {approx = true} : vector<32x1xf32> -> vector<32x1xf32>
    %75 = arith.truncf %71 : vector<32x32xf32> to vector<32x32xbf16>
    %cst_19 = arith.constant dense<0.000000e+00> : vector<32x8xf32>
    %76 = tpu.matmul %75, %56, %cst_19 {dimension_numbers = #tpu.dot_dimension_numbers<[1], [0], [0], [1], [0, 0, 1, 1], [], []>} : vector<32x32xbf16>, vector<32x8xbf16>, vector<32x8xf32> -> vector<32x8xf32>
    %77 = vector.broadcast %74 : vector<32x1xf32> to vector<32x8xf32>
    %78 = arith.mulf %76, %77 : vector<32x8xf32>
    %79 = tpu.concatenate %45, %78 in 1 : vector<32x8xf32>, vector<32x8xf32> -> vector<32x16xf32>
    %80 = vector.broadcast %9 : vector<1x16xf32> to vector<32x16xf32>
    %81 = arith.addf %79, %80 : vector<32x16xf32>
    %cst_20 = arith.constant 0.000000e+00 : f32
    %82 = vector.broadcast %cst_20 : f32 to vector<32x16xf32>
    %83 = arith.maximumf %81, %82 : vector<32x16xf32>
    %84 = arith.truncf %83 : vector<32x16xf32> to vector<32x16xbf16>
    %c0_21 = arith.constant 0 : index
    %c0_22 = arith.constant 0 : index
    %85 = vector.load %arg5[%c0_21, %c0_22] : memref<16x12xbf16, #tpu.memory_space<vmem>>, vector<16x12xbf16>
    %c0_23 = arith.constant 0 : index
    %c0_24 = arith.constant 0 : index
    %86 = vector.load %arg6[%c0_23, %c0_24] : memref<1x8xf32, #tpu.memory_space<vmem>>, vector<1x8xf32>
    %cst_25 = arith.constant dense<0.000000e+00> : vector<32x12xf32>
    %87 = tpu.matmul %84, %85, %cst_25 {dimension_numbers = #tpu.dot_dimension_numbers<[1], [0], [0], [1], [0, 0, 1, 1], [], []>} : vector<32x16xbf16>, vector<16x12xbf16>, vector<32x12xf32> -> vector<32x12xf32>
    %88 = vector.extract_strided_slice %87 {offsets = [0, 0], sizes = [32, 8], strides = [1, 1]} : vector<32x12xf32> to vector<32x8xf32>
    %89 = arith.truncf %88 : vector<32x8xf32> to vector<32x8xbf16>
    %90 = vector.extract_strided_slice %87 {offsets = [0, 8], sizes = [32, 1], strides = [1, 1]} : vector<32x12xf32> to vector<32x1xf32>
    %91 = vector.shape_cast %90 : vector<32x1xf32> to vector<32xf32>
    %92 = vector.shape_cast %91 : vector<32xf32> to vector<1x32xf32>
    %93 = vector.extract_strided_slice %87 {offsets = [0, 10], sizes = [32, 1], strides = [1, 1]} : vector<32x12xf32> to vector<32x1xf32>
    %94 = vector.shape_cast %93 : vector<32x1xf32> to vector<32xf32>
    %95 = vector.shape_cast %94 : vector<32xf32> to vector<32x1xf32>
    %96 = vector.shape_cast %92 : vector<1x32xf32> to vector<1x1x32xf32>
    %cst_26 = arith.constant dense<0xFF800000> : vector<1xf32>
    %97 = vector.multi_reduction <maximumf>, %96, %cst_26 [1, 2] : vector<1x1x32xf32> to vector<1xf32>
    %98 = vector.shape_cast %97 : vector<1xf32> to vector<1x1x1xf32>
    %99 = vector.extract %98[0, 0, 0] : f32 from vector<1x1x1xf32>
    %100 = vector.extract_strided_slice %89 {offsets = [0, 0], sizes = [32, 4], strides = [1, 1]} : vector<32x8xbf16> to vector<32x4xbf16>
    %101 = vector.broadcast %95 : vector<32x1xf32> to vector<32x32xf32>
    %102 = vector.broadcast %92 : vector<1x32xf32> to vector<32x32xf32>
    %103 = arith.addf %101, %102 : vector<32x32xf32>
    %cst_27 = arith.constant 2.000000e-01 : f32
    %104 = vector.broadcast %cst_27 : f32 to vector<32x32xf32>
    %105 = arith.mulf %104, %103 : vector<32x32xf32>
    %106 = arith.maximumf %103, %105 : vector<32x32xf32>
    %107 = vector.broadcast %99 : f32 to vector<32x1xf32>
    %108 = arith.addf %95, %107 : vector<32x1xf32>
    %cst_28 = arith.constant 2.000000e-01 : f32
    %109 = vector.broadcast %cst_28 : f32 to vector<32x1xf32>
    %110 = arith.mulf %109, %108 : vector<32x1xf32>
    %111 = arith.maximumf %108, %110 : vector<32x1xf32>
    %112 = arith.addf %106, %6 : vector<32x32xf32>
    %113 = vector.broadcast %111 : vector<32x1xf32> to vector<32x32xf32>
    %114 = arith.subf %112, %113 : vector<32x32xf32>
    %115 = math.exp %114 : vector<32x32xf32>
    %cst_29 = arith.constant dense<0.000000e+00> : vector<32xf32>
    %116 = vector.multi_reduction <add>, %115, %cst_29 [1] : vector<32x32xf32> to vector<32xf32>
    %117 = vector.shape_cast %116 : vector<32xf32> to vector<32x1xf32>
    %118 = tpu.reciprocal %117 {approx = true} : vector<32x1xf32> -> vector<32x1xf32>
    %119 = arith.truncf %115 : vector<32x32xf32> to vector<32x32xbf16>
    %cst_30 = arith.constant dense<0.000000e+00> : vector<32x4xf32>
    %120 = tpu.matmul %119, %100, %cst_30 {dimension_numbers = #tpu.dot_dimension_numbers<[1], [0], [0], [1], [0, 0, 1, 1], [], []>} : vector<32x32xbf16>, vector<32x4xbf16>, vector<32x4xf32> -> vector<32x4xf32>
    %121 = vector.broadcast %118 : vector<32x1xf32> to vector<32x4xf32>
    %122 = arith.mulf %120, %121 : vector<32x4xf32>
    %123 = vector.extract_strided_slice %87 {offsets = [0, 9], sizes = [32, 1], strides = [1, 1]} : vector<32x12xf32> to vector<32x1xf32>
    %124 = vector.shape_cast %123 : vector<32x1xf32> to vector<32xf32>
    %125 = vector.shape_cast %124 : vector<32xf32> to vector<1x32xf32>
    %126 = vector.extract_strided_slice %87 {offsets = [0, 11], sizes = [32, 1], strides = [1, 1]} : vector<32x12xf32> to vector<32x1xf32>
    %127 = vector.shape_cast %126 : vector<32x1xf32> to vector<32xf32>
    %128 = vector.shape_cast %127 : vector<32xf32> to vector<32x1xf32>
    %129 = vector.shape_cast %125 : vector<1x32xf32> to vector<1x1x32xf32>
    %cst_31 = arith.constant dense<0xFF800000> : vector<1xf32>
    %130 = vector.multi_reduction <maximumf>, %129, %cst_31 [1, 2] : vector<1x1x32xf32> to vector<1xf32>
    %131 = vector.shape_cast %130 : vector<1xf32> to vector<1x1x1xf32>
    %132 = vector.extract %131[0, 0, 0] : f32 from vector<1x1x1xf32>
    %133 = vector.extract_strided_slice %89 {offsets = [0, 4], sizes = [32, 4], strides = [1, 1]} : vector<32x8xbf16> to vector<32x4xbf16>
    %134 = vector.broadcast %128 : vector<32x1xf32> to vector<32x32xf32>
    %135 = vector.broadcast %125 : vector<1x32xf32> to vector<32x32xf32>
    %136 = arith.addf %134, %135 : vector<32x32xf32>
    %cst_32 = arith.constant 2.000000e-01 : f32
    %137 = vector.broadcast %cst_32 : f32 to vector<32x32xf32>
    %138 = arith.mulf %137, %136 : vector<32x32xf32>
    %139 = arith.maximumf %136, %138 : vector<32x32xf32>
    %140 = vector.broadcast %132 : f32 to vector<32x1xf32>
    %141 = arith.addf %128, %140 : vector<32x1xf32>
    %cst_33 = arith.constant 2.000000e-01 : f32
    %142 = vector.broadcast %cst_33 : f32 to vector<32x1xf32>
    %143 = arith.mulf %142, %141 : vector<32x1xf32>
    %144 = arith.maximumf %141, %143 : vector<32x1xf32>
    %145 = arith.addf %139, %6 : vector<32x32xf32>
    %146 = vector.broadcast %144 : vector<32x1xf32> to vector<32x32xf32>
    %147 = arith.subf %145, %146 : vector<32x32xf32>
    %148 = math.exp %147 : vector<32x32xf32>
    %cst_34 = arith.constant dense<0.000000e+00> : vector<32xf32>
    %149 = vector.multi_reduction <add>, %148, %cst_34 [1] : vector<32x32xf32> to vector<32xf32>
    %150 = vector.shape_cast %149 : vector<32xf32> to vector<32x1xf32>
    %151 = tpu.reciprocal %150 {approx = true} : vector<32x1xf32> -> vector<32x1xf32>
    %152 = arith.truncf %148 : vector<32x32xf32> to vector<32x32xbf16>
    %cst_35 = arith.constant dense<0.000000e+00> : vector<32x4xf32>
    %153 = tpu.matmul %152, %133, %cst_35 {dimension_numbers = #tpu.dot_dimension_numbers<[1], [0], [0], [1], [0, 0, 1, 1], [], []>} : vector<32x32xbf16>, vector<32x4xbf16>, vector<32x4xf32> -> vector<32x4xf32>
    %154 = vector.broadcast %151 : vector<32x1xf32> to vector<32x4xf32>
    %155 = arith.mulf %153, %154 : vector<32x4xf32>
    %156 = tpu.concatenate %122, %155 in 1 : vector<32x4xf32>, vector<32x4xf32> -> vector<32x8xf32>
    %157 = vector.broadcast %86 : vector<1x8xf32> to vector<32x8xf32>
    %158 = arith.addf %156, %157 : vector<32x8xf32>
    %cst_36 = arith.constant 0.000000e+00 : f32
    %159 = vector.broadcast %cst_36 : f32 to vector<32x8xf32>
    %160 = arith.maximumf %158, %159 : vector<32x8xf32>
    %161 = arith.truncf %160 : vector<32x8xf32> to vector<32x8xbf16>
    %c0_37 = arith.constant 0 : index
    %c0_38 = arith.constant 0 : index
    %162 = vector.load %arg7[%c0_37, %c0_38] : memref<8x6xbf16, #tpu.memory_space<vmem>>, vector<8x6xbf16>
    %c0_39 = arith.constant 0 : index
    %c0_40 = arith.constant 0 : index
    %163 = vector.load %arg8[%c0_39, %c0_40] : memref<1x4xf32, #tpu.memory_space<vmem>>, vector<1x4xf32>
    %cst_41 = arith.constant dense<0.000000e+00> : vector<32x6xf32>
    %164 = tpu.matmul %161, %162, %cst_41 {dimension_numbers = #tpu.dot_dimension_numbers<[1], [0], [0], [1], [0, 0, 1, 1], [], []>} : vector<32x8xbf16>, vector<8x6xbf16>, vector<32x6xf32> -> vector<32x6xf32>
    %165 = vector.extract_strided_slice %164 {offsets = [0, 0], sizes = [32, 4], strides = [1, 1]} : vector<32x6xf32> to vector<32x4xf32>
    %166 = arith.truncf %165 : vector<32x4xf32> to vector<32x4xbf16>
    %167 = vector.extract_strided_slice %164 {offsets = [0, 4], sizes = [32, 1], strides = [1, 1]} : vector<32x6xf32> to vector<32x1xf32>
    %168 = vector.shape_cast %167 : vector<32x1xf32> to vector<32xf32>
    %169 = vector.shape_cast %168 : vector<32xf32> to vector<1x32xf32>
    %170 = vector.extract_strided_slice %164 {offsets = [0, 5], sizes = [32, 1], strides = [1, 1]} : vector<32x6xf32> to vector<32x1xf32>
    %171 = vector.shape_cast %170 : vector<32x1xf32> to vector<32xf32>
    %172 = vector.shape_cast %171 : vector<32xf32> to vector<32x1xf32>
    %173 = vector.shape_cast %169 : vector<1x32xf32> to vector<1x1x32xf32>
    %cst_42 = arith.constant dense<0xFF800000> : vector<1xf32>
    %174 = vector.multi_reduction <maximumf>, %173, %cst_42 [1, 2] : vector<1x1x32xf32> to vector<1xf32>
    %175 = vector.shape_cast %174 : vector<1xf32> to vector<1x1x1xf32>
    %176 = vector.extract %175[0, 0, 0] : f32 from vector<1x1x1xf32>
    %177 = vector.broadcast %172 : vector<32x1xf32> to vector<32x32xf32>
    %178 = vector.broadcast %169 : vector<1x32xf32> to vector<32x32xf32>
    %179 = arith.addf %177, %178 : vector<32x32xf32>
    %cst_43 = arith.constant 2.000000e-01 : f32
    %180 = vector.broadcast %cst_43 : f32 to vector<32x32xf32>
    %181 = arith.mulf %180, %179 : vector<32x32xf32>
    %182 = arith.maximumf %179, %181 : vector<32x32xf32>
    %183 = vector.broadcast %176 : f32 to vector<32x1xf32>
    %184 = arith.addf %172, %183 : vector<32x1xf32>
    %cst_44 = arith.constant 2.000000e-01 : f32
    %185 = vector.broadcast %cst_44 : f32 to vector<32x1xf32>
    %186 = arith.mulf %185, %184 : vector<32x1xf32>
    %187 = arith.maximumf %184, %186 : vector<32x1xf32>
    %188 = arith.addf %182, %6 : vector<32x32xf32>
    %189 = vector.broadcast %187 : vector<32x1xf32> to vector<32x32xf32>
    %190 = arith.subf %188, %189 : vector<32x32xf32>
    %191 = math.exp %190 : vector<32x32xf32>
    %cst_45 = arith.constant dense<0.000000e+00> : vector<32xf32>
    %192 = vector.multi_reduction <add>, %191, %cst_45 [1] : vector<32x32xf32> to vector<32xf32>
    %193 = vector.shape_cast %192 : vector<32xf32> to vector<32x1xf32>
    %194 = tpu.reciprocal %193 {approx = true} : vector<32x1xf32> -> vector<32x1xf32>
    %195 = arith.truncf %191 : vector<32x32xf32> to vector<32x32xbf16>
    %cst_46 = arith.constant dense<0.000000e+00> : vector<32x4xf32>
    %196 = tpu.matmul %195, %166, %cst_46 {dimension_numbers = #tpu.dot_dimension_numbers<[1], [0], [0], [1], [0, 0, 1, 1], [], []>} : vector<32x32xbf16>, vector<32x4xbf16>, vector<32x4xf32> -> vector<32x4xf32>
    %197 = vector.broadcast %194 : vector<32x1xf32> to vector<32x4xf32>
    %198 = arith.mulf %196, %197 : vector<32x4xf32>
    %199 = vector.broadcast %163 : vector<1x4xf32> to vector<32x4xf32>
    %200 = arith.addf %198, %199 : vector<32x4xf32>
    %c0_47 = arith.constant 0 : index
    %c0_48 = arith.constant 0 : index
    %201 = vector.load %arg9[%c0_47, %c0_48] : memref<4x128xf32, #tpu.memory_space<vmem>>, vector<4x128xf32>
    %cst_49 = arith.constant dense<0.000000e+00> : vector<32x128xf32>
    %202 = tpu.matmul %200, %201, %cst_49 {dimension_numbers = #tpu.dot_dimension_numbers<[1], [0], [0], [1], [0, 0, 1, 1], [], []>} : vector<32x4xf32>, vector<4x128xf32>, vector<32x128xf32> -> vector<32x128xf32>
    %c0_50 = arith.constant 0 : index
    %c0_51 = arith.constant 0 : index
    %203 = vector.load %arg10[%c0_50, %c0_51] : memref<1x128xf32, #tpu.memory_space<vmem>>, vector<1x128xf32>
    %204 = vector.broadcast %203 : vector<1x128xf32> to vector<32x128xf32>
    %205 = arith.addf %202, %204 : vector<32x128xf32>
    %c0_52 = arith.constant 0 : index
    %c0_53 = arith.constant 0 : index
    %206 = vector.load %arg11[%c0_52, %c0_53] : memref<32x128xf32, #tpu.memory_space<vmem>>, vector<32x128xf32>
    tpu.vector_store %arg11[%c0_52, %c0_53], %205 {strides = array<i32>} : memref<32x128xf32, #tpu.memory_space<vmem>>, vector<32x128xf32>,
    return
  }
  func.func @transform_0(%arg0: i32) -> (i32, i32) {
    %c0_i32 = arith.constant 0 : i32
    %c0_i32_0 = arith.constant 0 : i32
    %c0_i32_1 = arith.constant 0 : i32
    return %c0_i32, %c0_i32_0 : i32, i32
  }
  func.func @transform_1(%arg0: i32) -> (i32, i32) {
    %c0_i32 = arith.constant 0 : i32
    %c0_i32_0 = arith.constant 0 : i32
    %c0_i32_1 = arith.constant 0 : i32
    return %c0_i32, %c0_i32_0 : i32, i32
  }
  func.func @transform_2(%arg0: i32) -> (i32, i32) {
    %c0_i32 = arith.constant 0 : i32
    %c0_i32_0 = arith.constant 0 : i32
    %c0_i32_1 = arith.constant 0 : i32
    return %c0_i32, %c0_i32_0 : i32, i32
  }
  func.func @transform_3(%arg0: i32) -> (i32, i32) {
    %c0_i32 = arith.constant 0 : i32
    %c0_i32_0 = arith.constant 0 : i32
    %c0_i32_1 = arith.constant 0 : i32
    return %c0_i32, %c0_i32_0 : i32, i32
  }
  func.func @transform_4(%arg0: i32) -> (i32, i32) {
    %c0_i32 = arith.constant 0 : i32
    %c0_i32_0 = arith.constant 0 : i32
    %c0_i32_1 = arith.constant 0 : i32
    return %c0_i32, %c0_i32_0 : i32, i32
  }
  func.func @transform_5(%arg0: i32) -> (i32, i32) {
    %c0_i32 = arith.constant 0 : i32
    %c0_i32_0 = arith.constant 0 : i32
    %c0_i32_1 = arith.constant 0 : i32
    return %c0_i32, %c0_i32_0 : i32, i32
  }
  func.func @transform_6(%arg0: i32) -> (i32, i32) {
    %c0_i32 = arith.constant 0 : i32
    %c0_i32_0 = arith.constant 0 : i32
    %c0_i32_1 = arith.constant 0 : i32
    return %c0_i32, %c0_i32_0 : i32, i32
  }
  func.func @transform_7(%arg0: i32) -> (i32, i32) {
    %c0_i32 = arith.constant 0 : i32
    %c0_i32_0 = arith.constant 0 : i32
    %c0_i32_1 = arith.constant 0 : i32
    return %c0_i32, %c0_i32_0 : i32, i32
  }
  func.func @transform_8(%arg0: i32) -> (i32, i32) {
    %c0_i32 = arith.constant 0 : i32
    %c0_i32_0 = arith.constant 0 : i32
    %c0_i32_1 = arith.constant 0 : i32
    return %c0_i32, %c0_i32_0 : i32, i32
  }
  func.func @transform_9(%arg0: i32) -> (i32, i32) {
    %c0_i32 = arith.constant 0 : i32
    %c0_i32_0 = arith.constant 0 : i32
    %c0_i32_1 = arith.constant 0 : i32
    return %c0_i32, %c0_i32_0 : i32, i32
  }
  func.func @transform_10(%arg0: i32) -> (i32, i32) {
    %c0_i32 = arith.constant 0 : i32
    %c0_i32_0 = arith.constant 0 : i32
    %c0_i32_1 = arith.constant 0 : i32
    return %c0_i32, %c0_i32_0 : i32, i32
  }
}

</mosaic_0001>

<bundles_post_ra>
// kernel: tpu_custom_call.1
= control target key start
LH: loop header
LB: loop body
LE: loop exit
PB: predicated region body
PF: predicated region fallthrough
CT: control target
= control target key end

     0   :  { %15 = vsyncpa [#allocation3], 0  ;;  %s1909_s0 = inlined_call_operand.vmem [shape: s8[32,32], index: 0, kind: input, shape index: {}]   ;;  %s1910_s1 = inlined_call_operand.vmem [shape: bf16[32,16], index: 1, kind: input, shape index: {}]   ;;  %s1911_s2 = inlined_call_operand.vmem [shape: bf16[16,20], index: 2, kind: input, shape index: {}]   ;;  %s1912_s3 = inlined_call_operand.hbm [shape: f32[1,16], index: 3, kind: input, shape index: {}]   ;;  %s1913_s4 = inlined_call_operand.vmem [shape: bf16[16,12], index: 4, kind: input, shape index: {}]   ;;  %s1914_s5 = inlined_call_operand.hbm [shape: f32[1,8], index: 5, kind: input, shape index: {}]   ;;  %s1915_s6 = inlined_call_operand.vmem [shape: bf16[8,6], index: 6, kind: input, shape index: {}]   ;;  %s1916_s7 = inlined_call_operand.vmem [shape: f32[1,4], index: 7, kind: input, shape index: {}]   ;;  %s1917_s8 = inlined_call_operand.hbm [shape: f32[4,128], index: 8, kind: input, shape index: {}]   ;;  %s1918_s9 = inlined_call_operand.vmem [shape: f32[1,128], index: 9, kind: input, shape index: {}]   ;;  %s1919_s10 = inlined_call_operand.hbm [shape: f32[32,128], index: 10, kind: output, shape index: {}]  }
   0x1   :  { %16 = vsyncpa [#allocation6], 0  ;;  %s42_s15 = sshll.u32 %s1914_s5, 4  ;;  %s43_s15 = int_to_ptr.hbm [resolvable:$true] %s42_s15 }
   0x2   :  { %17 = vsyncpa [#allocation4], 0  ;;  %s1564_s16 = smov [#allocation5]   ;;  %s29_s20 = sshll.u32 %s1912_s3, 4  ;;  %s30_s20 = int_to_ptr.hbm [resolvable:$true] %s29_s20 }
   0x3   :  { %s44_s17 = sshll.u32 %s1564_s16, 4  ;;  %s1565_s21 = smov [#allocation2]   ;;  %s45_s17 = int_to_ptr.vmem [resolvable:$true] %s44_s17 }
   0x4   :  { %47 = dma.hbm_to_vmem [thread:$0]  %s43_s15, 16, %s45_s17, [#allocation6]  }
   0x5   :  { %s31_s22 = sshll.u32 %s1565_s21, 4  ;;  %s57_s25 = sshll.u32 %s1917_s8, 4  ;;  %s32_s22 = int_to_ptr.vmem [resolvable:$true] %s31_s22  ;;  %s58_s25 = int_to_ptr.hbm [resolvable:$true] %s57_s25 }
   0x6   :  { %34 = dma.hbm_to_vmem [thread:$0]  %s30_s20, 16, %s32_s22, [#allocation3]  }
   0x7   :  { %s1566_s5 = smov [#allocation7]  }
   0x8   :  { %s59_s26 = sshll.u32 %s1566_s5, 4  ;;  %s60_s26 = int_to_ptr.vmem [resolvable:$true] %s59_s26 }
   0x9   :  { %62 = dma.hbm_to_vmem [thread:$0]  %s58_s25, 64, %s60_s26, [#allocation6]  }
   0xa   :  { %1558 = dma.done.wait [#allocation3], 16  }
   0xb   :  { %1559 = vsyncadd [#allocation3], 4294967280 }
   0xc   :  { %1560 = dma.done.wait [#allocation6], 80  }
   0xd   :  { %1561 = vsyncadd [#allocation6], 4294967216  ;;  %v1567_v0 = vmov 17   ;;  %v1314_v1 = vld [vmem:[%s1911_s2] sm:$0xff]  ;;  %v1313_v3 = vld [vmem:[%s1910_s1 + $0x8] sm:$0xff]  ;;  %vm118_vm0 = vcmask 130048  }
   0xe   :  { %1350 = vset.pattern.permute.xlu1 %v1567_v0  ;;  %1351 = vset.pattern.permute.xlu2 %v1567_v0  ;;  %v1312_v2 = vld [vmem:[%s1910_s1] sm:$0xff]  ;;  %v1568_v4 = vmov 19   ;;  %vm148_vm1 = vcmask 138368   ;;  %vm348_vm2 = vcmask 146568   ;;  %s1569_s1 = smov 112   ;;  %s1570_s2 = smov 111  }
   0xf   :  { %132 = vmatpush.bf16.msra.mxu0 %v1314_v1  ;;  %1316 = vmatpush.bf16.msra.mxu3 %v1314_v1  ;;  %v1571_v60 = vmov 16   ;;  %s1572_s13 = smov 120   ;;  %vm204_vm3 = vcmask 130112   ;;  %vm208_vm4 = vcmask 195712   ;;  %vm212_vm5 = vcmask 261312   ;;  %s1580_s20 = smov 124  }
  0x10   :  { %1352 = vset.pattern.permute.xlu0 %v1568_v4  ;;  %vm288_vm7 = vcmask 261120   ;;  %vm539_vm11 = vcmask 64512   ;;  %vm780_vm12 = vcmask 80968   ;;  %vm595_vm13 = vcmask 72768   ;;  %s1582_s21 = smov 4   ;;  %s1585_s26 = smov [#allocation8]  }
  0x11   :  { %vm997_vm14 = vcmask 1043456   ;;  %vm971_vm15 = vcmask 31744   ;;  %s1259_s3 = sshll.u32 %s1585_s26, 4  ;;  %s1261_s8 = sshll.u32 %s1919_s10, 4  ;;  %s1260_s3 = int_to_ptr.vmem [resolvable:$true] %s1259_s3  ;;  %s1262_s8 = int_to_ptr.hbm [resolvable:$true] %s1261_s8 }
  0x12   :  { %1287 = vmatmul.msk.bf16.vlgmr.msra.gmra.mxu0 %vm118_vm0, %v1312_v2  ;;  %1288 = vmatmul.msk.bf16.vlgmr.msra.gmra.mxu3 %vm118_vm0, %v1313_v3  ;;  %v1573_v2 = vmov 18  }
  0x8f   :  { %v1662_v5 = vpop.f32.mrf.mxu0 }
  0x90   :  { %384 = vperm.xlu1 %1350, %v1662_v5   ;;  %v149_v12 = vsel %vm148_vm1, %v1662_v5, -inf  ;;  %v349_v14 = vsel %vm348_vm2, %v1662_v5, -inf  ;;  %v144_v26 = vpack.c.bf16 %v1662_v5, %v1662_v5 }
  0x92   :  { %v311_v33 = vunpack.c.l.b16 %v144_v26 }
  0x95   :  { %v1665_v6 = vpop.f32.mrf.mxu3 }
  0x96   :  { %390 = vperm.xlu2 %1351, %v1665_v6   ;;  %v146_v8 = vpack.c.bf16 %v1665_v6, %v1665_v6  ;;  %v151_v13 = vsel %vm148_vm1, %v1665_v6, -inf  ;;  %v351_v15 = vsel %vm348_vm2, %v1665_v6, -inf }
  0x97   :  { %v1668_v7 = vpop.f32.mrf.mxu0 }
  0x98   :  { %387 = vperm.xlu1 %1350, %v1668_v7   ;;  %v150_v9 = vsel %vm148_vm1, %v1668_v7, -inf  ;;  %v350_v10 = vsel %vm348_vm2, %v1668_v7, -inf  ;;  %v145_v17 = vpack.c.bf16 %v1668_v7, %v1668_v7  ;;  %v313_v24 = vunpack.c.l.b16 %v146_v8 }
  0x99   :  { %v153_v20 = vmax.f32 %v149_v12, %v150_v9  ;;  %v353_v22 = vmax.f32 %v349_v14, %v350_v10 }
  0x9a   :  { %v312_v30 = vunpack.c.l.b16 %v145_v17 }
  0x9c   :  { %v315_v36 = vpack.c.b16 %v312_v30, %v311_v33 }
  0x9d   :  { %v1675_v11 = vpop.f32.mrf.mxu3 }
  0x9e   :  { %393 = vperm.xlu2 %1351, %v1675_v11   ;;  %v147_v16 = vpack.c.bf16 %v1675_v11, %v1675_v11  ;;  %v152_v18 = vsel %vm148_vm1, %v1675_v11, -inf  ;;  %v352_v19 = vsel %vm348_vm2, %v1675_v11, -inf }
  0x9f   :  { %v154_v21 = vmax.f32 %v151_v13, %v152_v18  ;;  %v354_v23 = vmax.f32 %v351_v15, %v352_v19 }
  0xa0   :  { %1353 = vset.pattern.permute.xlu1 %v1568_v4  ;;  %v314_v25 = vunpack.c.l.b16 %v147_v16  ;;  %v199_v16 = vlaneseq }
  0xa1   :  { %372 = vperm.xlu1 %1353, %v1668_v7   ;;  %v155_v27 = vmax.f32 %v153_v20, %v154_v21  ;;  %v355_v28 = vmax.f32 %v353_v22, %v354_v23 }
  0xa2   :  { %v316_v29 = vpack.c.b16 %v314_v25, %v313_v24  ;;  %v1712_v17 = vand.u32 127, %v199_v16 }
  0xa3   :  { %v156_v31 = vrot.slane %v155_v27, 4  ;;  %v356_v32 = vrot.slane %v355_v28, 4 }
  0xa4   :  { %331 = vmatpush.bf16.msra.mxu1 %v316_v29  ;;  %v1715_v18 = vadd.s32 4294967288, %v1712_v17  ;;  %v1719_v20 = vadd.s32 4294967280, %v1712_v17 }
  0xa5   :  { %v157_v34 = vmax.f32 %v155_v27, %v156_v31  ;;  %v357_v35 = vmax.f32 %v355_v28, %v356_v32  ;;  %v78_v27 = vld [vmem:[%s1909_s0] sm:$0xff]  ;;  %s1575_s0 = smov 8  }
  0xa6   :  { %1354 = vset.pattern.permute.xlu2 %v1568_v4  ;;  %v79_v28 = vunpack.c.0.s8 %v78_v27 }
  0xa7   :  { %v158_v37 = vrot.slane %v157_v34, 2  ;;  %v358_v39 = vrot.slane %v357_v35, 2 }
  0xa8   :  { %332 = vmatpush.bf16.msra.mxu1 %v315_v36  ;;  %v83_v31 = vcvt.s32.f32 %v79_v28 }
  0xa9   :  { %v159_v38 = vmax.f32 %v157_v34, %v158_v37  ;;  %v359_v42 = vmax.f32 %v357_v35, %v358_v39  ;;  %v1574_v34 = vmov 0.0  }
  0xaa   :  { %vm87_vm6 = vcmp.eq.f32.partialorder %v83_v31, 0.0 }
  0xab   :  { %v160_v40 = vrot.slane %v159_v38, 1  ;;  %v360_v43 = vrot.slane %v359_v42, 1  ;;  %v1733_v35 = vsel %vm87_vm6, -1e+30, %v1574_v34 }
  0xad   :  { %v161_v41 = vmax.f32 %v159_v38, %v160_v40  ;;  %v361_v44 = vmax.f32 %v359_v42, %v360_v43  ;;  %v80_v43 = vunpack.c.1.s8 %v78_v27 }
  0xaf   :  { %163 = vrot.lane.b32.xlu0 %v161_v41, %s1569_s1 }
  0xb7   :  { %363 = vrot.lane.b32.xlu0 %v361_v44, %s1570_s2  ;;  %v81_v44 = vunpack.c.2.s8 %v78_v27 }
  0xbf   :  { %368 = vperm.xlu0 %1352, %v1662_v5  }
  0xc7   :  { %376 = vperm.xlu0 %1352, %v1665_v6  }
 0x102   :  { %v385_v14 = vpop.permute.xlu1 %384 }
 0x10a   :  { %v388_v19 = vpop.permute.xlu1 %387 }
 0x113   :  { %v373_v40 = vpop.permute.xlu1 %372 }
 0x121   :  { %v164_v45 = vpop.permute.xlu0 %163 }
 0x122   :  { %1317 = vpush %v164_v45 }
 0x129   :  { %v364_v46 = vpop.permute.xlu0 %363 }
 0x12a   :  { %1319 = vpush %v364_v46 }
 0x131   :  { %v369_v26 = vpop.permute.xlu0 %368 }
 0x139   :  { %v377_v41 = vpop.permute.xlu0 %376 }
 0x153   :  { %s1318_s11 = spop %1317 }
 0x154   :  { %v239_v57 = vstv %s1318_s11 }
 0x155   :  { %v240_v59 = vadd.f32 %v239_v57, %v1662_v5  ;;  %v243_v0 = vadd.f32 %v239_v57, %v1675_v11  ;;  %v241_v8 = vadd.f32 %v239_v57, %v1668_v7  ;;  %v242_v12 = vadd.f32 %v239_v57, %v1665_v6 }
 0x157   :  { %v244_v62 = vmul.f32 0.2, %v240_v59  ;;  %v247_v3 = vmul.f32 0.2, %v243_v0  ;;  %v245_v9 = vmul.f32 0.2, %v241_v8 }
 0x158   :  { %v246_v13 = vmul.f32 0.2, %v242_v12 }
 0x159   :  { %v248_v1 = vmax.f32 %v240_v59, %v244_v62  ;;  %v251_v4 = vmax.f32 %v243_v0, %v247_v3  ;;  %v249_v10 = vmax.f32 %v241_v8, %v245_v9 }
 0x15a   :  { %v250_v15 = vmax.f32 %v242_v12, %v246_v13 }
 0x15b   :  { %s1320_s12 = spop %1319 }
 0x15c   :  { %v421_v47 = vstv %s1320_s12 }
 0x15d   :  { %v422_v48 = vadd.f32 %v421_v47, %v1662_v5  ;;  %v423_v49 = vadd.f32 %v421_v47, %v1668_v7  ;;  %v424_v50 = vadd.f32 %v421_v47, %v1665_v6  ;;  %v425_v58 = vadd.f32 %v421_v47, %v1675_v11 }
 0x15f   :  { %v428_v51 = vmul.f32 0.2, %v424_v50  ;;  %v427_v52 = vmul.f32 0.2, %v423_v49  ;;  %v426_v53 = vmul.f32 0.2, %v422_v48 }
 0x160   :  { %v429_v61 = vmul.f32 0.2, %v425_v58 }
 0x161   :  { %v432_v54 = vmax.f32 %v424_v50, %v428_v51  ;;  %v431_v55 = vmax.f32 %v423_v49, %v427_v52  ;;  %v430_v56 = vmax.f32 %v422_v48, %v426_v53  ;;  %v84_v49 = vcvt.s32.f32 %v80_v43 }
 0x162   :  { %v433_v63 = vmax.f32 %v425_v58, %v429_v61  ;;  %v85_v50 = vcvt.s32.f32 %v81_v44 }
 0x163   :  { %450 = vperm.xlu0 %1352, %v432_v54   ;;  %445 = vperm.xlu1 %1353, %v431_v55   ;;  %vm88_vm8 = vcmp.eq.f32.partialorder %v84_v49, 0.0 }
 0x164   :  { %440 = vperm.xlu2 %1354, %v430_v56   ;;  %vm89_vm9 = vcmp.eq.f32.partialorder %v85_v50, 0.0  ;;  %v1737_v56 = vsel %vm88_vm8, -1e+30, %v1574_v34 }
 0x165   :  { %v1739_v57 = vsel %vm89_vm9, -1e+30, %v1574_v34 }
 0x16b   :  { %1356 = vset.pattern.permute.xlu0 %v1571_v60  ;;  %380 = vperm.xlu1 %1353, %v1675_v11  }
 0x16c   :  { %490 = vrot.lane.b32.xlu2 %v316_v29, %s1572_s13  ;;  %191 = vperm.xlu0 %1356, %v1668_v7  }
 0x16d   :  { %1355 = vset.pattern.permute.xlu2 %v1571_v60 }
 0x173   :  { %455 = vperm.xlu1 %1353, %v433_v63  }
 0x174   :  { %488 = vrot.lane.b32.xlu2 %v315_v36, %s1572_s13  ;;  %1360 = vset.pattern.permute.xlu0 %v1573_v2 }
 0x175   :  { %258 = vperm.xlu0 %1360, %v248_v1   ;;  %v82_v1 = vunpack.c.3.s8 %v78_v27 }
 0x17b   :  { %1357 = vset.pattern.permute.xlu1 %v1571_v60 }
 0x17c   :  { %188 = vperm.xlu2 %1355, %v1662_v5   ;;  %194 = vperm.xlu1 %1357, %v1665_v6  }
 0x17d   :  { %273 = vperm.xlu0 %1360, %v251_v4   ;;  %v86_v4 = vcvt.s32.f32 %v82_v1 }
 0x17f   :  { %vm90_vm10 = vcmp.eq.f32.partialorder %v86_v4, 0.0 }
 0x184   :  { %197 = vperm.xlu2 %1355, %v1675_v11   ;;  %1358 = vset.pattern.permute.xlu1 %v1573_v2 }
 0x185   :  { %169 = vperm.xlu1 %1358, %v1662_v5   ;;  %v391_v5 = vpop.permute.xlu2 %390 }
 0x186   :  { %v398_v22 = vperm.slane %v391_v5, %v1719_v20  ;;  %v1744_v5 = vsel %vm90_vm10, -1e+30, %v1574_v34 }
 0x18c   :  { %1359 = vset.pattern.permute.xlu2 %v1573_v2 }
 0x18d   :  { %174 = vperm.xlu2 %1359, %v1668_v7   ;;  %263 = vperm.xlu1 %1358, %v249_v10   ;;  %v396_v7 = vperm.slane %v388_v19, %v1715_v18  ;;  %v394_v23 = vpop.permute.xlu2 %393 }
 0x195   :  { %179 = vperm.xlu2 %1359, %v1665_v6   ;;  %184 = vperm.xlu1 %1358, %v1675_v11   ;;  %v395_v6 = vperm.slane %v385_v14, %v1712_v17  ;;  %v1723_v11 = vadd.s32 4294967272, %v1712_v17 }
 0x197   :  { %v397_v21 = vsel %vm204_vm3, %v396_v7, %v395_v6  ;;  %v400_v25 = vperm.slane %v394_v23, %v1723_v11 }
 0x198   :  { %v399_v24 = vsel %vm208_vm4, %v398_v22, %v397_v21 }
 0x199   :  { %v401_v29 = vsel %vm212_vm5, %v400_v25, %v399_v24 }
 0x19a   :  { %v409_v30 = vadd.f32 %v401_v29, %v369_v26  ;;  %v410_v45 = vadd.f32 %v401_v29, %v373_v40  ;;  %v411_v46 = vadd.f32 %v401_v29, %v377_v41 }
 0x19c   :  { %v413_v32 = vmul.f32 0.2, %v409_v30  ;;  %v414_v51 = vmul.f32 0.2, %v410_v45  ;;  %v415_v52 = vmul.f32 0.2, %v411_v46 }
 0x19d   :  { %268 = vperm.xlu2 %1359, %v250_v15  }
 0x19e   :  { %v417_v33 = vmax.f32 %v409_v30, %v413_v32  ;;  %v418_v54 = vmax.f32 %v410_v45, %v414_v51  ;;  %v419_v55 = vmax.f32 %v411_v46, %v415_v52 }
 0x1a0   :  { %v434_v36 = vadd.f32 %v417_v33, %v1733_v35  ;;  %v435_v58 = vadd.f32 %v418_v54, %v1737_v56  ;;  %v436_v59 = vadd.f32 %v419_v55, %v1739_v57 }
 0x1be   :  { %v441_v37 = vpop.permute.xlu2 %440 }
 0x1bf   :  { %v458_v38 = vsub.f32 %v434_v36, %v441_v37 }
 0x1c1   :  { %v462_v39 = vmul.f32 1.442695, %v458_v38 }
 0x1c3   :  { %1382 = vpow2.f32 %v462_v39 }
 0x1c6   :  { %v491_v42 = vpop.permute.xlu2 %490 }
 0x1c7   :  { %506 = vmatpush.bf16.msra.mxu2 %v491_v42 }
 0x1c9   :  { %v1383_v47 = vpop.eup %1382 }
 0x1ca   :  { %v470_v48 = vsel %vm288_vm7, %v1383_v47, 0.0 }
 0x1cb   :  { %471 = vadd.xlane.f32.xlu1 %v470_v48 }
 0x1ce   :  { %v489_v53 = vpop.permute.xlu2 %488 }
 0x1cf   :  { %507 = vmatpush.bf16.msra.mxu2 %v489_v53 }
 0x1d5   :  { %v446_v60 = vpop.permute.xlu1 %445  ;;  %v451_v61 = vpop.permute.xlu0 %450 }
 0x1d6   :  { %v459_v62 = vsub.f32 %v435_v58, %v446_v60  ;;  %v460_v63 = vsub.f32 %v436_v59, %v451_v61  ;;  %v189_v0 = vpop.permute.xlu2 %188 }
 0x1d7   :  { %v201_v27 = vperm.slane %v189_v0, %v1712_v17 }
 0x1d8   :  { %v464_v2 = vmul.f32 1.442695, %v459_v62  ;;  %v466_v3 = vmul.f32 1.442695, %v460_v63 }
 0x1da   :  { %1384 = vpow2.f32 %v464_v2 }
 0x1db   :  { %1386 = vpow2.f32 %v466_v3 }
 0x1dd   :  { %v381_v8 = vpop.permute.xlu1 %380 }
 0x1de   :  { %v412_v9 = vadd.f32 %v401_v29, %v381_v8  ;;  %v198_v10 = vpop.permute.xlu2 %197  ;;  %v192_v25 = vpop.permute.xlu0 %191 }
 0x1df   :  { %v203_v26 = vperm.slane %v192_v25, %v1715_v18  ;;  %v211_v31 = vperm.slane %v198_v10, %v1723_v11 }
 0x1e0   :  { %v1385_v12 = vpop.eup %1384  ;;  %v416_v13 = vmul.f32 0.2, %v412_v9 }
 0x1e1   :  { %v1387_v14 = vpop.eup %1386  ;;  %v473_v15 = vsel %vm288_vm7, %v1385_v12, 0.0  ;;  %v486_v16 = vpack.c.bf16 %v1385_v12, %v1383_v47  ;;  %v205_v32 = vsel %vm204_vm3, %v203_v26, %v201_v27 }
 0x1e2   :  { %v420_v19 = vmax.f32 %v412_v9, %v416_v13  ;;  %v476_v7 = vsel %vm288_vm7, %v1387_v14, 0.0  ;;  %474 = vadd.xlane.f32.xlu2 %v473_v15 }
 0x1e3   :  { %477 = vadd.xlane.f32.xlu0 %v476_v7  ;;  %1291 = vmatmul.msk.bf16.vlgmr.msra.gmra.mxu2 %vm288_vm7, %v486_v16 }
 0x1e4   :  { %v437_v6 = vadd.f32 %v420_v19, %v1744_v5 }
 0x1e5   :  { %v456_v21 = vpop.permute.xlu1 %455 }
 0x1e6   :  { %v461_v22 = vsub.f32 %v437_v6, %v456_v21 }
 0x1e7   :  { %v175_v24 = vpop.permute.xlu2 %174  ;;  %v259_v52 = vpop.permute.xlu0 %258 }
 0x1e8   :  { %v468_v23 = vmul.f32 1.442695, %v461_v22 }
 0x1ea   :  { %1388 = vpow2.f32 %v468_v23 }
 0x1ee   :  { %v195_v28 = vpop.permute.xlu1 %194 }
 0x1ef   :  { %v207_v29 = vperm.slane %v195_v28, %v1719_v20  ;;  %v180_v38 = vpop.permute.xlu2 %179  ;;  %v274_v13 = vpop.permute.xlu0 %273 }
 0x1f0   :  { %v1389_v30 = vpop.eup %1388 }
 0x1f1   :  { %v209_v33 = vsel %vm208_vm4, %v207_v29, %v205_v32  ;;  %v479_v34 = vsel %vm288_vm7, %v1389_v30, 0.0  ;;  %v487_v36 = vpack.c.bf16 %v1389_v30, %v1387_v14 }
 0x1f2   :  { %v213_v37 = vsel %vm212_vm5, %v211_v31, %v209_v33  ;;  %480 = vadd.xlane.f32.xlu2 %v479_v34 }
 0x1f3   :  { %v229_v39 = vadd.f32 %v213_v37, %v180_v38  ;;  %1292 = vmatmul.msk.bf16.gmra.mxu2 %vm288_vm7, %v487_v36  ;;  %v228_v40 = vadd.f32 %v213_v37, %v175_v24 }
 0x1f5   :  { %v233_v41 = vmul.f32 0.2, %v229_v39  ;;  %v232_v42 = vmul.f32 0.2, %v228_v40 }
 0x1f7   :  { %v170_v43 = vpop.permute.xlu1 %169  ;;  %v237_v45 = vmax.f32 %v229_v39, %v233_v41  ;;  %v236_v47 = vmax.f32 %v228_v40, %v232_v42  ;;  %v269_v58 = vpop.permute.xlu2 %268  ;;  %v1315_v39 = vld [vmem:[%s1913_s4] sm:$0xff]  ;;  %s1578_s4 = smov 119  }
 0x1f8   :  { %v227_v44 = vadd.f32 %v213_v37, %v170_v43  ;;  %579 = vmatpush.bf16.msrb.mxu3 %v1315_v39 }
 0x1f9   :  { %v254_v49 = vadd.f32 %v237_v45, %v1739_v57  ;;  %v253_v51 = vadd.f32 %v236_v47, %v1737_v56 }
 0x1fa   :  { %v231_v46 = vmul.f32 0.2, %v227_v44 }
 0x1fb   :  { %v278_v59 = vsub.f32 %v254_v49, %v269_v58 }
 0x1fc   :  { %v235_v48 = vmax.f32 %v227_v44, %v231_v46 }
 0x1fd   :  { %v284_v62 = vmul.f32 1.442695, %v278_v59 }
 0x1fe   :  { %v252_v50 = vadd.f32 %v235_v48, %v1733_v35  ;;  %v1378_v48 = vld [vmem:[#allocation2] ss:$0 sm:$0xff] }
 0x1ff   :  { %v264_v53 = vpop.permute.xlu1 %263 }
 0x200   :  { %v276_v54 = vsub.f32 %v252_v50, %v259_v52  ;;  %v277_v55 = vsub.f32 %v253_v51, %v264_v53 }
 0x202   :  { %v280_v60 = vmul.f32 1.442695, %v276_v54  ;;  %v282_v61 = vmul.f32 1.442695, %v277_v55 }
 0x204   :  { %1390 = vpow2.f32 %v282_v61 }
 0x205   :  { %1392 = vpow2.f32 %v280_v60 }
 0x206   :  { %1394 = vpow2.f32 %v284_v62 }
 0x207   :  { %v185_v63 = vpop.permute.xlu1 %184 }
 0x208   :  { %v230_v0 = vadd.f32 %v213_v37, %v185_v63 }
 0x20a   :  { %v1391_v1 = vpop.eup %1390  ;;  %v234_v2 = vmul.f32 0.2, %v230_v0 }
 0x20b   :  { %v1393_v3 = vpop.eup %1392  ;;  %v292_v4 = vsel %vm288_vm7, %v1391_v1, 0.0 }
 0x20c   :  { %v238_v8 = vmax.f32 %v230_v0, %v234_v2  ;;  %293 = vadd.xlane.f32.xlu2 %v292_v4  ;;  %v289_v9 = vsel %vm288_vm7, %v1393_v3, 0.0  ;;  %v305_v10 = vpack.c.bf16 %v1391_v1, %v1393_v3  ;;  %v1395_v14 = vpop.eup %1394 }
 0x20d   :  { %290 = vadd.xlane.f32.xlu1 %v289_v9  ;;  %v295_v19 = vsel %vm288_vm7, %v1395_v14, 0.0 }
 0x20e   :  { %v255_v12 = vadd.f32 %v238_v8, %v1744_v5  ;;  %1289 = vmatmul.msk.bf16.vlgmr.msra.gmra.mxu1 %vm288_vm7, %v305_v10 }
 0x210   :  { %v279_v15 = vsub.f32 %v255_v12, %v274_v13 }
 0x212   :  { %v286_v16 = vmul.f32 1.442695, %v279_v15 }
 0x214   :  { %296 = vadd.xlane.f32.xlu2 %v295_v19  ;;  %1396 = vpow2.f32 %v286_v16  ;;  %v1576_v19 = vmov 9  }
 0x215   :  { %1363 = vset.pattern.permute.xlu2 %v1576_v19  ;;  %1362 = vset.pattern.permute.xlu0 %v1576_v19 }
 0x216   :  { %1361 = vset.pattern.permute.xlu1 %v1576_v19 }
 0x21a   :  { %v1397_v7 = vpop.eup %1396 }
 0x21b   :  { %v298_v6 = vsel %vm288_vm7, %v1397_v7, 0.0  ;;  %v306_v21 = vpack.c.bf16 %v1397_v7, %v1395_v14 }
 0x21c   :  { %299 = vadd.xlane.f32.xlu2 %v298_v6 }
 0x21e   :  { %1290 = vmatmul.msk.bf16.gmra.mxu1 %vm288_vm7, %v306_v21 }
 0x23e   :  { %v472_v22 = vpop.xlane.xlu1 %471 }
 0x23f   :  { %1398 = vrcp.f32 %v472_v22 }
 0x245   :  { %v1399_v24 = vpop.eup %1398 }
 0x255   :  { %v475_v23 = vpop.xlane.xlu2 %474 }
 0x256   :  { %1400 = vrcp.f32 %v475_v23  ;;  %v478_v27 = vpop.xlane.xlu0 %477 }
 0x257   :  { %1402 = vrcp.f32 %v478_v27 }
 0x25c   :  { %v1401_v28 = vpop.eup %1400 }
 0x25d   :  { %v1403_v32 = vpop.eup %1402 }
 0x265   :  { %v481_v31 = vpop.xlane.xlu2 %480 }
 0x266   :  { %v509_v25 = vpop.f32.mrf.mxu2  ;;  %1404 = vrcp.f32 %v481_v31 }
 0x267   :  { %v519_v26 = vmul.f32 %v1399_v24, %v509_v25 }
 0x269   :  { %527 = vrot.lane.b32.xlu0 %v519_v26, %s1575_s0 }
 0x26c   :  { %v1405_v36 = vpop.eup %1404 }
 0x26e   :  { %v511_v29 = vpop.f32.mrf.mxu2 }
 0x26f   :  { %v520_v30 = vmul.f32 %v1401_v28, %v511_v29 }
 0x271   :  { %529 = vrot.lane.b32.xlu1 %v520_v30, %s1575_s0 }
 0x276   :  { %v514_v33 = vpop.f32.mrf.mxu2 }
 0x277   :  { %v521_v34 = vmul.f32 %v1403_v32, %v514_v33 }
 0x279   :  { %531 = vrot.lane.b32.xlu0 %v521_v34, %s1575_s0 }
 0x27e   :  { %v516_v37 = vpop.f32.mrf.mxu2 }
 0x27f   :  { %v522_v38 = vmul.f32 %v1405_v36, %v516_v37  ;;  %v294_v41 = vpop.xlane.xlu2 %293 }
 0x280   :  { %v291_v42 = vpop.xlane.xlu1 %290 }
 0x281   :  { %533 = vrot.lane.b32.xlu2 %v522_v38, %s1575_s0  ;;  %1406 = vrcp.f32 %v291_v42 }
 0x282   :  { %1408 = vrcp.f32 %v294_v41 }
 0x287   :  { %v297_v44 = vpop.xlane.xlu2 %296  ;;  %v1407_v45 = vpop.eup %1406 }
 0x288   :  { %v1409_v50 = vpop.eup %1408  ;;  %1410 = vrcp.f32 %v297_v44 }
 0x28b   :  { %v334_v40 = vpop.f32.mrf.mxu1 }
 0x28c   :  { %v344_v47 = vmul.f32 %v1407_v45, %v334_v40 }
 0x28e   :  { %v1411_v63 = vpop.eup %1410 }
 0x28f   :  { %v300_v55 = vpop.xlane.xlu2 %299 }
 0x290   :  { %1412 = vrcp.f32 %v300_v55 }
 0x293   :  { %v336_v43 = vpop.f32.mrf.mxu1 }
 0x294   :  { %v345_v52 = vmul.f32 %v1409_v50, %v336_v43 }
 0x296   :  { %v1413_v3 = vpop.eup %1412 }
 0x29b   :  { %v339_v51 = vpop.f32.mrf.mxu1 }
 0x29c   :  { %v346_v2 = vmul.f32 %v1411_v63, %v339_v51 }
 0x2a3   :  { %v341_v0 = vpop.f32.mrf.mxu1 }
 0x2a4   :  { %v347_v8 = vmul.f32 %v1413_v3, %v341_v0 }
 0x2db   :  { %v528_v46 = vpop.permute.xlu0 %527  ;;  %v534_v4 = vpop.permute.xlu2 %533 }
 0x2dc   :  { %v540_v49 = vsel %vm539_vm11, %v344_v47, %v528_v46  ;;  %v543_v10 = vsel %vm539_vm11, %v347_v8, %v534_v4 }
 0x2dd   :  { %v547_v53 = vadd.f32 %v1378_v48, %v540_v49  ;;  %v550_v13 = vadd.f32 %v1378_v48, %v543_v10 }
 0x2df   :  { %v551_v60 = vmax.f32 %v547_v53, 0.0  ;;  %v554_v15 = vmax.f32 %v550_v13, 0.0 }
 0x2e3   :  { %v530_v54 = vpop.permute.xlu1 %529 }
 0x2e4   :  { %v541_v58 = vsel %vm539_vm11, %v345_v52, %v530_v54  ;;  %v1577_v52 = vmov 11  }
 0x2e5   :  { %v548_v59 = vadd.f32 %v1378_v48, %v541_v58 }
 0x2e7   :  { %v552_v61 = vmax.f32 %v548_v59, 0.0 }
 0x2e9   :  { %v555_v62 = vpack.c.bf16 %v552_v61, %v551_v60 }
 0x2eb   :  { %v532_v1 = vpop.permute.xlu0 %531  ;;  %1297 = vmatmul.msk.bf16.vlgmr.msrb.gmra.mxu3 %vm118_vm0, %v555_v62 }
 0x2ec   :  { %v542_v9 = vsel %vm539_vm11, %v346_v2, %v532_v1 }
 0x2ed   :  { %v549_v12 = vadd.f32 %v1378_v48, %v542_v9 }
 0x2ef   :  { %v553_v14 = vmax.f32 %v549_v12, 0.0 }
 0x2f1   :  { %v556_v16 = vpack.c.bf16 %v554_v15, %v553_v14 }
 0x2fb   :  { %1298 = vmatmul.msk.bf16.gmra.mxu3 %vm118_vm0, %v556_v16  ;;  %vm1022_vm0 = vcmask 39968  }
 0x36e   :  { %v1781_v7 = vpop.f32.mrf.mxu3 }
 0x36f   :  { %v781_v27 = vsel %vm780_vm12, %v1781_v7, -inf  ;;  %v596_v29 = vsel %vm595_vm13, %v1781_v7, -inf  ;;  %v591_v41 = vpack.c.bf16 %v1781_v7, %v1781_v7 }
 0x371   :  { %v743_v48 = vunpack.c.l.b16 %v591_v41 }
 0x376   :  { %v1783_v6 = vpop.f32.mrf.mxu3 }
 0x377   :  { %v782_v23 = vsel %vm780_vm12, %v1783_v6, -inf  ;;  %v597_v24 = vsel %vm595_vm13, %v1783_v6, -inf  ;;  %v592_v26 = vpack.c.bf16 %v1783_v6, %v1783_v6 }
 0x378   :  { %v785_v34 = vmax.f32 %v781_v27, %v782_v23  ;;  %v600_v37 = vmax.f32 %v596_v29, %v597_v24 }
 0x379   :  { %v744_v45 = vunpack.c.l.b16 %v592_v26 }
 0x37b   :  { %v747_v51 = vpack.c.b16 %v744_v45, %v743_v48 }
 0x37e   :  { %v1785_v21 = vpop.f32.mrf.mxu3 }
 0x37f   :  { %v593_v22 = vpack.c.bf16 %v1785_v21, %v1785_v21  ;;  %v783_v28 = vsel %vm780_vm12, %v1785_v21, -inf  ;;  %v598_v32 = vsel %vm595_vm13, %v1785_v21, -inf }
 0x381   :  { %v745_v39 = vunpack.c.l.b16 %v593_v22  ;;  %v1579_v22 = vmov 8  }
 0x386   :  { %v1791_v25 = vpop.f32.mrf.mxu3 }
 0x387   :  { %825 = vperm.xlu2 %1363, %v1791_v25   ;;  %v594_v30 = vpack.c.bf16 %v1791_v25, %v1791_v25  ;;  %v784_v31 = vsel %vm780_vm12, %v1791_v25, -inf  ;;  %v599_v33 = vsel %vm595_vm13, %v1791_v25, -inf }
 0x388   :  { %v786_v36 = vmax.f32 %v783_v28, %v784_v31  ;;  %v601_v38 = vmax.f32 %v598_v32, %v599_v33  ;;  %v1581_v28 = vmov 10  }
 0x389   :  { %v746_v40 = vunpack.c.l.b16 %v594_v30 }
 0x38a   :  { %v787_v42 = vmax.f32 %v785_v34, %v786_v36  ;;  %v602_v43 = vmax.f32 %v600_v37, %v601_v38 }
 0x38b   :  { %v748_v44 = vpack.c.b16 %v746_v40, %v745_v39 }
 0x38c   :  { %v788_v46 = vrot.slane %v787_v42, 4  ;;  %v603_v47 = vrot.slane %v602_v43, 4 }
 0x38d   :  { %763 = vmatpush.bf16.msrb.mxu0 %v748_v44 }
 0x38e   :  { %v789_v49 = vmax.f32 %v787_v42, %v788_v46  ;;  %v604_v50 = vmax.f32 %v602_v43, %v603_v47 }
 0x38f   :  { %1366 = vset.pattern.permute.xlu2 %v1577_v52 }
 0x390   :  { %v790_v53 = vrot.slane %v789_v49, 2  ;;  %v605_v54 = vrot.slane %v604_v50, 2 }
 0x391   :  { %764 = vmatpush.bf16.msrb.mxu0 %v747_v51 }
 0x392   :  { %v791_v55 = vmax.f32 %v789_v49, %v790_v53  ;;  %v606_v58 = vmax.f32 %v604_v50, %v605_v54 }
 0x394   :  { %v792_v59 = vrot.slane %v791_v55, 1  ;;  %v607_v60 = vrot.slane %v606_v58, 1 }
 0x396   :  { %v793_v61 = vmax.f32 %v791_v55, %v792_v59  ;;  %v608_v62 = vmax.f32 %v606_v58, %v607_v60 }
 0x398   :  { %795 = vrot.lane.b32.xlu0 %v793_v61, %s1578_s4  ;;  %610 = vrot.lane.b32.xlu1 %v608_v62, %s1572_s13 }
 0x3a0   :  { %819 = vperm.xlu0 %1362, %v1783_v6   ;;  %816 = vperm.xlu1 %1361, %v1781_v7  }
 0x3a8   :  { %1365 = vset.pattern.permute.xlu0 %v1577_v52  ;;  %822 = vperm.xlu1 %1361, %v1785_v21  }
 0x3a9   :  { %804 = vperm.xlu0 %1365, %v1783_v6  }
 0x3b0   :  { %1364 = vset.pattern.permute.xlu1 %v1577_v52 }
 0x3b1   :  { %812 = vperm.xlu0 %1365, %v1791_v25   ;;  %800 = vperm.xlu1 %1364, %v1781_v7  }
 0x3e1   :  { %v826_v43 = vpop.permute.xlu2 %825 }
 0x40a   :  { %v796_v63 = vpop.permute.xlu0 %795  ;;  %v611_v0 = vpop.permute.xlu1 %610 }
 0x40b   :  { %1321 = vpush %v611_v0 }
 0x40c   :  { %1323 = vpush %v796_v63 }
 0x412   :  { %v817_v37 = vpop.permute.xlu1 %816  ;;  %v820_v40 = vpop.permute.xlu0 %819 }
 0x413   :  { %v827_v41 = vperm.slane %v817_v37, %v1712_v17 }
 0x41b   :  { %v805_v50 = vpop.permute.xlu0 %804 }
 0x423   :  { %v813_v55 = vpop.permute.xlu0 %812 }
 0x43c   :  { %s1322_s18 = spop %1321 }
 0x43d   :  { %s1324_s19 = spop %1323  ;;  %v672_v15 = vstv %s1322_s18 }
 0x43e   :  { %v853_v1 = vstv %s1324_s19  ;;  %v674_v19 = vadd.f32 %v672_v15, %v1783_v6  ;;  %v673_v29 = vadd.f32 %v672_v15, %v1781_v7  ;;  %v675_v32 = vadd.f32 %v672_v15, %v1785_v21 }
 0x43f   :  { %v854_v2 = vadd.f32 %v853_v1, %v1781_v7  ;;  %v855_v3 = vadd.f32 %v853_v1, %v1783_v6  ;;  %v857_v4 = vadd.f32 %v853_v1, %v1791_v25  ;;  %v856_v16 = vadd.f32 %v853_v1, %v1785_v21 }
 0x440   :  { %v678_v24 = vmul.f32 0.2, %v674_v19  ;;  %v677_v30 = vmul.f32 0.2, %v673_v29  ;;  %v676_v33 = vadd.f32 %v672_v15, %v1791_v25  ;;  %v679_v34 = vmul.f32 0.2, %v675_v32 }
 0x441   :  { %v861_v8 = vmul.f32 0.2, %v857_v4  ;;  %v859_v9 = vmul.f32 0.2, %v855_v3  ;;  %v858_v10 = vmul.f32 0.2, %v854_v2 }
 0x442   :  { %v860_v23 = vmul.f32 0.2, %v856_v16  ;;  %v682_v27 = vmax.f32 %v674_v19, %v678_v24  ;;  %v681_v31 = vmax.f32 %v673_v29, %v677_v30  ;;  %v680_v36 = vmul.f32 0.2, %v676_v33 }
 0x443   :  { %v865_v12 = vmax.f32 %v857_v4, %v861_v8  ;;  %v863_v13 = vmax.f32 %v855_v3, %v859_v9  ;;  %v862_v14 = vmax.f32 %v854_v2, %v858_v10  ;;  %v683_v38 = vmax.f32 %v675_v32, %v679_v34 }
 0x444   :  { %v864_v26 = vmax.f32 %v856_v16, %v860_v23  ;;  %v684_v39 = vmax.f32 %v676_v33, %v680_v36 }
 0x445   :  { %887 = vperm.xlu0 %1365, %v865_v12   ;;  %877 = vperm.xlu1 %1364, %v863_v13  }
 0x446   :  { %872 = vperm.xlu2 %1366, %v862_v14  }
 0x44d   :  { %1369 = vset.pattern.permute.xlu0 %v1579_v22  ;;  %808 = vperm.xlu1 %1364, %v1785_v21  }
 0x44e   :  { %922 = vrot.lane.b32.xlu2 %v748_v44, %s1580_s20  ;;  %641 = vperm.xlu0 %1369, %v1785_v21   ;;  %v832_v44 = vperm.slane %v826_v43, %v1723_v11 }
 0x44f   :  { %1367 = vset.pattern.permute.xlu2 %v1579_v22 }
 0x455   :  { %882 = vperm.xlu1 %1364, %v864_v26  }
 0x456   :  { %920 = vrot.lane.b32.xlu2 %v747_v51, %s1580_s20  ;;  %1372 = vset.pattern.permute.xlu0 %v1581_v28 }
 0x457   :  { %696 = vperm.xlu0 %1372, %v682_v27  }
 0x45d   :  { %1368 = vset.pattern.permute.xlu1 %v1579_v22 }
 0x45e   :  { %635 = vperm.xlu2 %1367, %v1781_v7   ;;  %638 = vperm.xlu1 %1368, %v1783_v6  }
 0x466   :  { %644 = vperm.xlu2 %1367, %v1791_v25   ;;  %1370 = vset.pattern.permute.xlu1 %v1581_v28 }
 0x467   :  { %616 = vperm.xlu1 %1370, %v1781_v7   ;;  %v823_v7 = vpop.permute.xlu1 %822 }
 0x468   :  { %v830_v42 = vperm.slane %v823_v7, %v1719_v20 }
 0x46e   :  { %1371 = vset.pattern.permute.xlu2 %v1581_v28 }
 0x46f   :  { %621 = vperm.xlu2 %1371, %v1783_v6   ;;  %691 = vperm.xlu1 %1370, %v681_v31   ;;  %v828_v6 = vperm.slane %v820_v40, %v1715_v18  ;;  %v801_v45 = vpop.permute.xlu1 %800 }
 0x477   :  { %626 = vperm.xlu2 %1371, %v1785_v21   ;;  %631 = vperm.xlu1 %1370, %v1791_v25   ;;  %v829_v21 = vsel %vm204_vm3, %v828_v6, %v827_v41 }
 0x478   :  { %v831_v25 = vsel %vm208_vm4, %v830_v42, %v829_v21 }
 0x479   :  { %v833_v46 = vsel %vm212_vm5, %v832_v44, %v831_v25 }
 0x47a   :  { %v841_v47 = vadd.f32 %v833_v46, %v801_v45  ;;  %v842_v59 = vadd.f32 %v833_v46, %v805_v50  ;;  %v844_v60 = vadd.f32 %v833_v46, %v813_v55 }
 0x47c   :  { %v845_v48 = vmul.f32 0.2, %v841_v47  ;;  %v846_v63 = vmul.f32 0.2, %v842_v59  ;;  %v848_v0 = vmul.f32 0.2, %v844_v60 }
 0x47e   :  { %v849_v49 = vmax.f32 %v841_v47, %v845_v48  ;;  %v850_v2 = vmax.f32 %v842_v59, %v846_v63  ;;  %v852_v3 = vmax.f32 %v844_v60, %v848_v0 }
 0x47f   :  { %701 = vperm.xlu2 %1371, %v683_v38   ;;  %706 = vperm.xlu1 %1370, %v684_v39  }
 0x480   :  { %v866_v51 = vadd.f32 %v849_v49, %v1733_v35  ;;  %v869_v4 = vadd.f32 %v852_v3, %v1744_v5  ;;  %v867_v8 = vadd.f32 %v850_v2, %v1737_v56 }
 0x4a0   :  { %v873_v52 = vpop.permute.xlu2 %872 }
 0x4a1   :  { %v890_v53 = vsub.f32 %v866_v51, %v873_v52 }
 0x4a3   :  { %v894_v54 = vmul.f32 1.442695, %v890_v53 }
 0x4a5   :  { %1414 = vpow2.f32 %v894_v54 }
 0x4a8   :  { %v923_v58 = vpop.permute.xlu2 %922 }
 0x4a9   :  { %938 = vmatpush.bf16.msra.mxu3 %v923_v58 }
 0x4ab   :  { %v1415_v61 = vpop.eup %1414 }
 0x4ac   :  { %v902_v62 = vsel %vm288_vm7, %v1415_v61, 0.0 }
 0x4ad   :  { %903 = vadd.xlane.f32.xlu0 %v902_v62 }
 0x4b0   :  { %v921_v1 = vpop.permute.xlu2 %920 }
 0x4b1   :  { %939 = vmatpush.bf16.msra.mxu3 %v921_v1 }
 0x4b7   :  { %v888_v9 = vpop.permute.xlu0 %887  ;;  %v878_v10 = vpop.permute.xlu1 %877 }
 0x4b8   :  { %v893_v12 = vsub.f32 %v869_v4, %v888_v9  ;;  %v891_v13 = vsub.f32 %v867_v8, %v878_v10  ;;  %v636_v14 = vpop.permute.xlu2 %635 }
 0x4b9   :  { %v646_v7 = vperm.slane %v636_v14, %v1712_v17 }
 0x4ba   :  { %v900_v15 = vmul.f32 1.442695, %v893_v12  ;;  %v896_v16 = vmul.f32 1.442695, %v891_v13 }
 0x4bc   :  { %1416 = vpow2.f32 %v900_v15 }
 0x4bd   :  { %1418 = vpow2.f32 %v896_v16 }
 0x4bf   :  { %v809_v19 = vpop.permute.xlu1 %808 }
 0x4c0   :  { %v843_v22 = vadd.f32 %v833_v46, %v809_v19  ;;  %v645_v23 = vpop.permute.xlu2 %644  ;;  %v642_v38 = vpop.permute.xlu0 %641 }
 0x4c1   :  { %v649_v41 = vperm.slane %v642_v38, %v1719_v20  ;;  %v651_v42 = vperm.slane %v645_v23, %v1723_v11 }
 0x4c2   :  { %v1417_v24 = vpop.eup %1416  ;;  %v847_v26 = vmul.f32 0.2, %v843_v22 }
 0x4c3   :  { %v1419_v27 = vpop.eup %1418  ;;  %v911_v28 = vsel %vm288_vm7, %v1417_v24, 0.0 }
 0x4c4   :  { %v918_v29 = vpack.c.bf16 %v1419_v27, %v1415_v61  ;;  %v851_v30 = vmax.f32 %v843_v22, %v847_v26  ;;  %912 = vadd.xlane.f32.xlu0 %v911_v28  ;;  %v905_v31 = vsel %vm288_vm7, %v1419_v27, 0.0 }
 0x4c5   :  { %906 = vadd.xlane.f32.xlu2 %v905_v31 }
 0x4c6   :  { %1301 = vmatmul.msk.bf16.vlgmr.msra.gmra.mxu3 %vm288_vm7, %v918_v29  ;;  %v868_v32 = vadd.f32 %v851_v30, %v1739_v57 }
 0x4c7   :  { %v883_v33 = vpop.permute.xlu1 %882 }
 0x4c8   :  { %v892_v34 = vsub.f32 %v868_v32, %v883_v33 }
 0x4c9   :  { %v622_v37 = vpop.permute.xlu2 %621  ;;  %v697_v59 = vpop.permute.xlu0 %696 }
 0x4ca   :  { %v898_v36 = vmul.f32 1.442695, %v892_v34 }
 0x4cc   :  { %1420 = vpow2.f32 %v898_v36 }
 0x4d0   :  { %v639_v39 = vpop.permute.xlu1 %638 }
 0x4d1   :  { %v647_v40 = vperm.slane %v639_v39, %v1715_v18  ;;  %v627_v46 = vpop.permute.xlu2 %626 }
 0x4d2   :  { %v1421_v6 = vpop.eup %1420 }
 0x4d3   :  { %v648_v43 = vsel %vm204_vm3, %v647_v40, %v646_v7  ;;  %v908_v21 = vsel %vm288_vm7, %v1421_v6, 0.0  ;;  %v919_v25 = vpack.c.bf16 %v1417_v24, %v1421_v6 }
 0x4d4   :  { %v650_v44 = vsel %vm208_vm4, %v649_v41, %v648_v43  ;;  %909 = vadd.xlane.f32.xlu1 %v908_v21 }
 0x4d5   :  { %v652_v45 = vsel %vm212_vm5, %v651_v42, %v650_v44 }
 0x4d6   :  { %v661_v47 = vadd.f32 %v652_v45, %v622_v37  ;;  %v662_v48 = vadd.f32 %v652_v45, %v627_v46  ;;  %1302 = vmatmul.msk.bf16.gmra.mxu3 %vm288_vm7, %v919_v25 }
 0x4d8   :  { %v665_v49 = vmul.f32 0.2, %v661_v47  ;;  %v666_v50 = vmul.f32 0.2, %v662_v48 }
 0x4d9   :  { %v617_v51 = vpop.permute.xlu1 %616  ;;  %v702_v63 = vpop.permute.xlu2 %701 }
 0x4da   :  { %v669_v52 = vmax.f32 %v661_v47, %v665_v49  ;;  %v670_v53 = vmax.f32 %v662_v48, %v666_v50  ;;  %v660_v54 = vadd.f32 %v652_v45, %v617_v51  ;;  %v989_v47 = vld [vmem:[%s1915_s6] sm:$0xf] }
 0x4db   :  { %v999_v48 = vsel %vm997_vm14, %v989_v47, 0 }
 0x4dc   :  { %v664_v55 = vmul.f32 0.2, %v660_v54  ;;  %v686_v58 = vadd.f32 %v669_v52, %v1737_v56  ;;  %v687_v60 = vadd.f32 %v670_v53, %v1739_v57  ;;  %1008 = vmatpush.bf16.msrb.mxu1 %v999_v48 }
 0x4de   :  { %v668_v61 = vmax.f32 %v660_v54, %v664_v55  ;;  %v710_v62 = vsub.f32 %v686_v58, %v697_v59  ;;  %v711_v2 = vsub.f32 %v687_v60, %v702_v63  ;;  %v1379_v58 = vld [vmem:[#allocation5] ss:$0 sm:$0xff] }
 0x4e0   :  { %v685_v0 = vadd.f32 %v668_v61, %v1733_v35  ;;  %v715_v1 = vmul.f32 1.442695, %v710_v62  ;;  %v717_v9 = vmul.f32 1.442695, %v711_v2  ;;  %v1584_v2 = vmov 5  }
 0x4e1   :  { %v692_v3 = vpop.permute.xlu1 %691  ;;  %1375 = vset.pattern.permute.xlu1 %v1584_v2 }
 0x4e2   :  { %v709_v4 = vsub.f32 %v685_v0, %v692_v3  ;;  %1422 = vpow2.f32 %v715_v1  ;;  %v1583_v1 = vmov 4  }
 0x4e3   :  { %1373 = vset.pattern.permute.xlu0 %v1583_v1  ;;  %1374 = vset.pattern.permute.xlu2 %v1583_v1 }
 0x4e4   :  { %v713_v8 = vmul.f32 1.442695, %v709_v4 }
 0x4e6   :  { %1424 = vpow2.f32 %v713_v8 }
 0x4e7   :  { %1426 = vpow2.f32 %v717_v9 }
 0x4e8   :  { %v1423_v10 = vpop.eup %1422 }
 0x4e9   :  { %v632_v12 = vpop.permute.xlu1 %631  ;;  %v724_v14 = vsel %vm288_vm7, %v1423_v10, 0.0 }
 0x4ea   :  { %v663_v13 = vadd.f32 %v652_v45, %v632_v12  ;;  %725 = vadd.xlane.f32.xlu1 %v724_v14 }
 0x4ec   :  { %v1425_v15 = vpop.eup %1424  ;;  %v667_v16 = vmul.f32 0.2, %v663_v13 }
 0x4ed   :  { %v721_v19 = vsel %vm288_vm7, %v1425_v15, 0.0  ;;  %v737_v22 = vpack.c.bf16 %v1423_v10, %v1425_v15  ;;  %v1427_v24 = vpop.eup %1426 }
 0x4ee   :  { %v671_v23 = vmax.f32 %v663_v13, %v667_v16  ;;  %722 = vadd.xlane.f32.xlu2 %v721_v19  ;;  %v727_v29 = vsel %vm288_vm7, %v1427_v24, 0.0 }
 0x4ef   :  { %1299 = vmatmul.msk.bf16.vlgmr.msrb.gmra.mxu0 %vm288_vm7, %v737_v22 }
 0x4f0   :  { %v688_v26 = vadd.f32 %v671_v23, %v1744_v5 }
 0x4f1   :  { %v707_v27 = vpop.permute.xlu1 %706 }
 0x4f2   :  { %v712_v28 = vsub.f32 %v688_v26, %v707_v27  ;;  %728 = vadd.xlane.f32.xlu1 %v727_v29 }
 0x4f4   :  { %v719_v30 = vmul.f32 1.442695, %v712_v28 }
 0x4f6   :  { %1428 = vpow2.f32 %v719_v30 }
 0x4fc   :  { %v1429_v31 = vpop.eup %1428 }
 0x4fd   :  { %v730_v32 = vsel %vm288_vm7, %v1429_v31, 0.0  ;;  %v738_v33 = vpack.c.bf16 %v1429_v31, %v1427_v24 }
 0x4fe   :  { %731 = vadd.xlane.f32.xlu1 %v730_v32 }
 0x4ff   :  { %1300 = vmatmul.msk.bf16.gmra.mxu0 %vm288_vm7, %v738_v33 }
 0x520   :  { %v904_v34 = vpop.xlane.xlu0 %903 }
 0x521   :  { %1430 = vrcp.f32 %v904_v34 }
 0x527   :  { %v1431_v37 = vpop.eup %1430 }
 0x537   :  { %v913_v42 = vpop.xlane.xlu0 %912 }
 0x538   :  { %v907_v36 = vpop.xlane.xlu2 %906 }
 0x539   :  { %1432 = vrcp.f32 %v907_v36 }
 0x53f   :  { %v1433_v40 = vpop.eup %1432 }
 0x547   :  { %v910_v7 = vpop.xlane.xlu1 %909 }
 0x548   :  { %1434 = vrcp.f32 %v910_v7 }
 0x549   :  { %v941_v38 = vpop.f32.mrf.mxu3  ;;  %1436 = vrcp.f32 %v913_v42 }
 0x54a   :  { %v951_v39 = vmul.f32 %v1431_v37, %v941_v38 }
 0x54c   :  { %959 = vrot.lane.b32.xlu0 %v951_v39, %s1582_s21 }
 0x54e   :  { %v1435_v43 = vpop.eup %1434 }
 0x54f   :  { %v1437_v44 = vpop.eup %1436 }
 0x551   :  { %v943_v6 = vpop.f32.mrf.mxu3 }
 0x552   :  { %v952_v41 = vmul.f32 %v1433_v40, %v943_v6 }
 0x554   :  { %961 = vrot.lane.b32.xlu2 %v952_v41, %s1582_s21 }
 0x559   :  { %v946_v21 = vpop.f32.mrf.mxu3 }
 0x55a   :  { %v953_v25 = vmul.f32 %v1435_v43, %v946_v21 }
 0x55c   :  { %963 = vrot.lane.b32.xlu0 %v953_v25, %s1582_s21 }
 0x55d   :  { %v726_v50 = vpop.xlane.xlu1 %725 }
 0x55e   :  { %1438 = vrcp.f32 %v726_v50 }
 0x561   :  { %v948_v45 = vpop.f32.mrf.mxu3  ;;  %v723_v51 = vpop.xlane.xlu2 %722 }
 0x562   :  { %v954_v46 = vmul.f32 %v1437_v44, %v948_v45  ;;  %1440 = vrcp.f32 %v723_v51 }
 0x564   :  { %965 = vrot.lane.b32.xlu1 %v954_v46, %s1582_s21  ;;  %v1439_v53 = vpop.eup %1438 }
 0x565   :  { %v729_v9 = vpop.xlane.xlu1 %728 }
 0x566   :  { %1442 = vrcp.f32 %v729_v9 }
 0x568   :  { %v1441_v60 = vpop.eup %1440 }
 0x56c   :  { %v766_v49 = vpop.f32.mrf.mxu0  ;;  %v1443_v14 = vpop.eup %1442 }
 0x56d   :  { %v776_v61 = vmul.f32 %v1441_v60, %v766_v49 }
 0x571   :  { %v732_v13 = vpop.xlane.xlu1 %731 }
 0x572   :  { %1444 = vrcp.f32 %v732_v13 }
 0x574   :  { %v768_v52 = vpop.f32.mrf.mxu0 }
 0x575   :  { %v777_v55 = vmul.f32 %v1439_v53, %v768_v52 }
 0x578   :  { %v1445_v23 = vpop.eup %1444 }
 0x57c   :  { %v771_v12 = vpop.f32.mrf.mxu0 }
 0x57d   :  { %v778_v16 = vmul.f32 %v1443_v14, %v771_v12 }
 0x584   :  { %v773_v19 = vpop.f32.mrf.mxu0 }
 0x585   :  { %v779_v24 = vmul.f32 %v1445_v23, %v773_v19 }
 0x5ae   :  { %v962_v54 = vpop.permute.xlu2 %961 }
 0x5af   :  { %v973_v59 = vsel %vm971_vm15, %v777_v55, %v962_v54 }
 0x5b0   :  { %v980_v62 = vadd.f32 %v1379_v58, %v973_v59 }
 0x5b2   :  { %v984_v4 = vmax.f32 %v980_v62, 0.0 }
 0x5be   :  { %v960_v63 = vpop.permute.xlu0 %959 }
 0x5bf   :  { %v972_v0 = vsel %vm971_vm15, %v776_v61, %v960_v63 }
 0x5c0   :  { %v979_v3 = vadd.f32 %v1379_v58, %v972_v0 }
 0x5c2   :  { %v983_v8 = vmax.f32 %v979_v3, 0.0 }
 0x5c4   :  { %v987_v10 = vpack.c.bf16 %v984_v4, %v983_v8 }
 0x5c6   :  { %1303 = vmatmul.msk.bf16.vlgmr.msrb.gmra.mxu1 %vm539_vm11, %v987_v10 }
 0x5ce   :  { %v964_v15 = vpop.permute.xlu0 %963 }
 0x5cf   :  { %v974_v22 = vsel %vm971_vm15, %v778_v16, %v964_v15 }
 0x5d0   :  { %v981_v26 = vadd.f32 %v1379_v58, %v974_v22 }
 0x5d2   :  { %v985_v30 = vmax.f32 %v981_v26, 0.0 }
 0x5d6   :  { %v966_v27 = vpop.permute.xlu1 %965 }
 0x5d7   :  { %v975_v28 = vsel %vm971_vm15, %v779_v24, %v966_v27 }
 0x5d8   :  { %v982_v29 = vadd.f32 %v1379_v58, %v975_v28 }
 0x5da   :  { %v986_v31 = vmax.f32 %v982_v29, 0.0 }
 0x5dc   :  { %v988_v32 = vpack.c.bf16 %v986_v31, %v985_v30 }
 0x5de   :  { %1304 = vmatmul.msk.bf16.gmra.mxu1 %vm539_vm11, %v988_v32 }
 0x643   :  { %v1010_v33 = vpop.f32.mrf.mxu1 }
 0x644   :  { %1043 = vperm.xlu1 %1375, %v1010_v33   ;;  %1062 = vperm.xlu0 %1373, %v1010_v33   ;;  %v1023_v39 = vsel %vm1022_vm0, %v1010_v33, -inf }
 0x64b   :  { %v1012_v34 = vpop.f32.mrf.mxu1 }
 0x64c   :  { %v1024_v37 = vsel %vm1022_vm0, %v1012_v34, -inf  ;;  %v1020_v21 = vpack.c.bf16 %v1012_v34, %v1010_v33 }
 0x64d   :  { %v1027_v41 = vmax.f32 %v1023_v39, %v1024_v37 }
 0x65b   :  { %v1015_v36 = vpop.f32.mrf.mxu1 }
 0x65c   :  { %v1025_v7 = vsel %vm1022_vm0, %v1015_v36, -inf }
 0x663   :  { %v1017_v38 = vpop.f32.mrf.mxu1 }
 0x664   :  { %v1026_v40 = vsel %vm1022_vm0, %v1017_v38, -inf  ;;  %1071 = vperm.xlu0 %1373, %v1017_v38   ;;  %v1021_v6 = vpack.c.bf16 %v1017_v38, %v1015_v36 }
 0x665   :  { %v1028_v42 = vmax.f32 %v1025_v7, %v1026_v40 }
 0x666   :  { %1178 = vmatpush.bf16.msrb.mxu2 %v1021_v6 }
 0x667   :  { %v1029_v43 = vmax.f32 %v1027_v41, %v1028_v42 }
 0x669   :  { %v1030_v25 = vrot.slane %v1029_v43, 4 }
 0x66a   :  { %1179 = vmatpush.bf16.msrb.mxu2 %v1020_v21 }
 0x66b   :  { %v1031_v44 = vmax.f32 %v1029_v43, %v1030_v25 }
 0x66c   :  { %1377 = vset.pattern.permute.xlu0 %v1584_v2 }
 0x66d   :  { %v1032_v45 = vrot.slane %v1031_v44, 2 }
 0x66f   :  { %v1033_v46 = vmax.f32 %v1031_v44, %v1032_v45 }
 0x671   :  { %v1034_v47 = vrot.slane %v1033_v46, 1 }
 0x673   :  { %v1035_v48 = vmax.f32 %v1033_v46, %v1034_v47 }
 0x675   :  { %1037 = vrot.lane.b32.xlu2 %v1035_v48, %s1580_s20 }
 0x67d   :  { %1065 = vperm.xlu2 %1374, %v1012_v34  }
 0x685   :  { %1068 = vperm.xlu2 %1374, %v1015_v36  }
 0x68d   :  { %1376 = vset.pattern.permute.xlu2 %v1584_v2 }
 0x68e   :  { %1048 = vperm.xlu2 %1376, %v1012_v34  }
 0x696   :  { %1053 = vperm.xlu2 %1376, %v1015_v36  }
 0x6b6   :  { %v1063_v3 = vpop.permute.xlu0 %1062  ;;  %v1044_v28 = vpop.permute.xlu1 %1043 }
 0x6b7   :  { %v1073_v10 = vperm.slane %v1063_v3, %v1712_v17 }
 0x6cf   :  { %v1038_v49 = vpop.permute.xlu2 %1037 }
 0x6d0   :  { %1325 = vpush %v1038_v49 }
 0x6d6   :  { %v1072_v12 = vpop.permute.xlu0 %1071 }
 0x6d7   :  { %v1066_v1 = vpop.permute.xlu2 %1065  ;;  %v1078_v15 = vperm.slane %v1072_v12, %v1723_v11 }
 0x6d8   :  { %v1074_v8 = vperm.slane %v1066_v1, %v1715_v18 }
 0x6da   :  { %v1075_v13 = vsel %vm204_vm3, %v1074_v8, %v1073_v10 }
 0x6df   :  { %v1069_v2 = vpop.permute.xlu2 %1068 }
 0x6e0   :  { %v1076_v9 = vperm.slane %v1069_v2, %v1719_v20 }
 0x6e2   :  { %v1077_v14 = vsel %vm208_vm4, %v1076_v9, %v1075_v13 }
 0x6e3   :  { %v1079_v19 = vsel %vm212_vm5, %v1078_v15, %v1077_v14 }
 0x6e4   :  { %v1087_v31 = vadd.f32 %v1079_v19, %v1044_v28 }
 0x6e6   :  { %v1091_v32 = vmul.f32 0.2, %v1087_v31 }
 0x6e8   :  { %v1049_v4 = vpop.permute.xlu2 %1048 }
 0x6e9   :  { %v1088_v29 = vadd.f32 %v1079_v19, %v1049_v4 }
 0x6eb   :  { %v1092_v11 = vmul.f32 0.2, %v1088_v29 }
 0x6f0   :  { %v1054_v16 = vpop.permute.xlu2 %1053 }
 0x6f1   :  { %v1089_v22 = vadd.f32 %v1079_v19, %v1054_v16  ;;  %v1381_v16 = vld [vmem:[%s1918_s9] ss:$0 sm:$0xff]  ;;  %s1586_s9 = smov 128  }
 0x6f3   :  { %v1093_v23 = vmul.f32 0.2, %v1089_v22 }
 0x6f5   :  { %v1097_v24 = vmax.f32 %v1089_v22, %v1093_v23 }
 0x6f7   :  { %v1114_v26 = vadd.f32 %v1097_v24, %v1739_v57 }
 0x701   :  { %s1326_s6 = spop %1325 }
 0x702   :  { %v1099_v50 = vstv %s1326_s6 }
 0x703   :  { %v1100_v51 = vadd.f32 %v1099_v50, %v1010_v33  ;;  %v1101_v52 = vadd.f32 %v1099_v50, %v1012_v34  ;;  %v1102_v53 = vadd.f32 %v1099_v50, %v1015_v36  ;;  %v1103_v62 = vadd.f32 %v1099_v50, %v1017_v38 }
 0x704   :  { %v1096_v33 = vmax.f32 %v1088_v29, %v1092_v11  ;;  %v1095_v34 = vmax.f32 %v1087_v31, %v1091_v32 }
 0x705   :  { %v1104_v54 = vmul.f32 0.2, %v1100_v51  ;;  %v1105_v55 = vmul.f32 0.2, %v1101_v52  ;;  %v1106_v58 = vmul.f32 0.2, %v1102_v53 }
 0x706   :  { %v1107_v63 = vmul.f32 0.2, %v1103_v62  ;;  %v1113_v36 = vadd.f32 %v1096_v33, %v1737_v56  ;;  %v1112_v57 = vadd.f32 %v1095_v34, %v1733_v35 }
 0x707   :  { %v1110_v59 = vmax.f32 %v1102_v53, %v1106_v58  ;;  %v1109_v60 = vmax.f32 %v1101_v52, %v1105_v55  ;;  %v1108_v61 = vmax.f32 %v1100_v51, %v1104_v54  ;;  %v1202_v53 = vld [vmem:[#allocation7] sm:$0xf] }
 0x708   :  { %v1111_v0 = vmax.f32 %v1103_v62, %v1107_v63  ;;  %1307 = vmatpush.msk.msra.mxu0 %vm997_vm14, %v1202_v53 }
 0x709   :  { %1128 = vperm.xlu2 %1376, %v1110_v59   ;;  %1123 = vperm.xlu1 %1375, %v1109_v60  }
 0x70a   :  { %1118 = vperm.xlu0 %1377, %v1108_v61  }
 0x711   :  { %1058 = vperm.xlu1 %1375, %v1017_v38  }
 0x712   :  { %1133 = vperm.xlu0 %1377, %v1111_v0  }
 0x763   :  { %v1129_v18 = vpop.permute.xlu2 %1128 }
 0x764   :  { %v1138_v27 = vsub.f32 %v1114_v26, %v1129_v18 }
 0x766   :  { %v1144_v20 = vmul.f32 1.442695, %v1138_v27 }
 0x768   :  { %1446 = vpow2.f32 %v1144_v20 }
 0x76e   :  { %v1447_v17 = vpop.eup %1446 }
 0x76f   :  { %v1154_v30 = vsel %vm288_vm7, %v1447_v17, 0.0 }
 0x770   :  { %1155 = vadd.xlane.f32.xlu0 %v1154_v30 }
 0x77b   :  { %v1124_v37 = vpop.permute.xlu1 %1123 }
 0x77c   :  { %v1137_v38 = vsub.f32 %v1113_v36, %v1124_v37  ;;  %v1119_v39 = vpop.permute.xlu0 %1118 }
 0x77d   :  { %v1136_v7 = vsub.f32 %v1112_v57, %v1119_v39 }
 0x77e   :  { %v1142_v40 = vmul.f32 1.442695, %v1137_v38 }
 0x77f   :  { %v1140_v6 = vmul.f32 1.442695, %v1136_v7 }
 0x780   :  { %1448 = vpow2.f32 %v1142_v40 }
 0x781   :  { %1450 = vpow2.f32 %v1140_v6 }
 0x783   :  { %v1059_v41 = vpop.permute.xlu1 %1058 }
 0x784   :  { %v1090_v42 = vadd.f32 %v1079_v19, %v1059_v41  ;;  %v1134_v47 = vpop.permute.xlu0 %1133 }
 0x786   :  { %v1449_v43 = vpop.eup %1448  ;;  %v1094_v21 = vmul.f32 0.2, %v1090_v42 }
 0x787   :  { %v1451_v25 = vpop.eup %1450  ;;  %v1151_v44 = vsel %vm288_vm7, %v1449_v43, 0.0 }
 0x788   :  { %v1098_v45 = vmax.f32 %v1090_v42, %v1094_v21  ;;  %v1148_v56 = vsel %vm288_vm7, %v1451_v25, 0.0  ;;  %1152 = vadd.xlane.f32.xlu2 %v1151_v44  ;;  %v1164_v46 = vpack.c.bf16 %v1449_v43, %v1451_v25 }
 0x789   :  { %1149 = vadd.xlane.f32.xlu1 %v1148_v56 }
 0x78a   :  { %v1115_v35 = vadd.f32 %v1098_v45, %v1744_v5  ;;  %1305 = vmatmul.msk.bf16.vlgmr.msrb.gmra.mxu2 %vm288_vm7, %v1164_v46  ;;  %v1380_v5 = vld [vmem:[%s1916_s7] ss:$0 sm:$0xff] }
 0x78c   :  { %v1139_v48 = vsub.f32 %v1115_v35, %v1134_v47 }
 0x78e   :  { %v1146_v49 = vmul.f32 1.442695, %v1139_v48 }
 0x790   :  { %1452 = vpow2.f32 %v1146_v49 }
 0x796   :  { %v1453_v50 = vpop.eup %1452 }
 0x797   :  { %v1157_v51 = vsel %vm288_vm7, %v1453_v50, 0.0  ;;  %v1165_v52 = vpack.c.bf16 %v1453_v50, %v1447_v17 }
 0x798   :  { %1158 = vadd.xlane.f32.xlu1 %v1157_v51 }
 0x79a   :  { %1306 = vmatmul.msk.bf16.gmra.mxu2 %vm288_vm7, %v1165_v52 }
 0x7e3   :  { %v1156_v62 = vpop.xlane.xlu0 %1155 }
 0x7fb   :  { %v1153_v55 = vpop.xlane.xlu2 %1152 }
 0x7fc   :  { %v1150_v54 = vpop.xlane.xlu1 %1149 }
 0x7fd   :  { %1454 = vrcp.f32 %v1150_v54 }
 0x7fe   :  { %1456 = vrcp.f32 %v1153_v55 }
 0x7ff   :  { %1458 = vrcp.f32 %v1156_v62 }
 0x803   :  { %v1455_v58 = vpop.eup %1454 }
 0x804   :  { %v1457_v63 = vpop.eup %1456 }
 0x805   :  { %v1459_v4 = vpop.eup %1458 }
 0x80b   :  { %v1159_v3 = vpop.xlane.xlu1 %1158 }
 0x80c   :  { %1460 = vrcp.f32 %v1159_v3 }
 0x80d   :  { %v1181_v59 = vpop.f32.mrf.mxu2 }
 0x80e   :  { %v1191_v60 = vmul.f32 %v1455_v58, %v1181_v59 }
 0x810   :  { %v1198_v61 = vadd.f32 %v1380_v5, %v1191_v60 }
 0x812   :  { %1308 = vmatmul.msk.f32.vlgmr.msra.gmra.mxu0 %vm971_vm15, %v1198_v61  ;;  %v1461_v12 = vpop.eup %1460 }
 0x815   :  { %v1183_v0 = vpop.f32.mrf.mxu2 }
 0x816   :  { %v1192_v1 = vmul.f32 %v1457_v63, %v1183_v0 }
 0x818   :  { %v1199_v2 = vadd.f32 %v1380_v5, %v1192_v1 }
 0x81a   :  { %1309 = vmatmul.msk.f32.gmra.mxu0 %vm971_vm15, %v1199_v2 }
 0x81d   :  { %v1186_v8 = vpop.f32.mrf.mxu2 }
 0x81e   :  { %v1193_v9 = vmul.f32 %v1459_v4, %v1186_v8 }
 0x820   :  { %v1200_v10 = vadd.f32 %v1380_v5, %v1193_v9 }
 0x822   :  { %1310 = vmatmul.msk.f32.gmra.mxu0 %vm971_vm15, %v1200_v10 }
 0x825   :  { %v1188_v13 = vpop.f32.mrf.mxu2 }
 0x826   :  { %v1194_v14 = vmul.f32 %v1461_v12, %v1188_v13 }
 0x828   :  { %v1201_v15 = vadd.f32 %v1380_v5, %v1194_v14 }
 0x82a   :  { %1311 = vmatmul.msk.f32.gmra.mxu0 %vm971_vm15, %v1201_v15 }
 0x88f   :  { %v1239_v19 = vpop.f32.mrf.mxu0 }
 0x890   :  { %v1240_v22 = vadd.f32 %v1381_v16, %v1239_v19 }
 0x892   :  { %1251 = vst [vmem:[#allocation8] sm:$0xff] %v1240_v22 }
 0x897   :  { %v1242_v23 = vpop.f32.mrf.mxu0 }
 0x898   :  { %v1243_v24 = vadd.f32 %v1381_v16, %v1242_v23 }
 0x89a   :  { %1252 = vst [vmem:[#allocation8 + $0x8] sm:$0xff] %v1243_v24 }
 0x89f   :  { %v1245_v26 = vpop.f32.mrf.mxu0 }
 0x8a0   :  { %v1246_v18 = vadd.f32 %v1381_v16, %v1245_v26 }
 0x8a2   :  { %1253 = vst [vmem:[#allocation8 + $0x10] sm:$0xff] %v1246_v18 }
 0x8a7   :  { %v1248_v27 = vpop.f32.mrf.mxu0 }
 0x8a8   :  { %v1249_v20 = vadd.f32 %v1381_v16, %v1248_v27 }
 0x8aa   :  { %1254 = vst [vmem:[#allocation8 + $0x18] sm:$0xff] %v1249_v20 }
 0x8ab   :  { %1267 = dma.vmem_to_hbm [thread:$0]  %s1260_s3, 512, %s1262_s8, [#allocation4], %s1586_s9, %s1586_s9, %s1575_s0  }
 0x8ac   :  { %1562 = dma.done.wait [#allocation4], 512  }
 0x8ad   :  { %1563 = vsyncadd [#allocation4], 4294966784 }
 0x8ae   :  { %1272 = vsyncpa [#allocation3], 1 }
 0x8af   :  { %1273 = vsyncpa [#allocation6], 1 }
 0x8b0   :  { %1274 = vsyncpa [#allocation4], 1 }

</bundles_post_ra>
